<compile_context>
chip_gen: v7x
topology: tpu7x:2x2x1
jax: 0.10.0
libtpu: 0.0.40
codegen_flags: <defaults>
</compile_context>

<pallas_src>
import functools

import jax
import jax.numpy as jnp
from jax.experimental import pallas as pl
from jax.experimental.pallas import tpu as pltpu

BN_EPS = 1e-5
_NEG = -1e30  # "-inf" for max-pool padding; never survives (center tap always valid)


# ----------------------------------------------------------------------------
# Kernels
# ----------------------------------------------------------------------------
def _stage1_kernel(x_ref, wcat_ref, w4_ref, y_ref, sum_ref, sq_ref, *, H, W):
    """Fused: [b1 | b2_1x1_a | b3_1x1_a] 1x1 convs (one matmul) + branch-4
    3x3/s1/p1 maxpool + 1x1 conv.  Emits raw conv outputs (no bias; it cancels
    under batch-stat BN) and per-channel sum / sumsq partials for this image."""
    P = H * W
    x = x_ref[0]                                        # (Cin, P) f32
    xb = x.astype(jnp.bfloat16)

    # Three 1x1 convs fused into one (Ccat3, Cin) @ (Cin, P) matmul.
    y_cat = jnp.dot(wcat_ref[...], xb, preferred_element_type=jnp.float32)

    # 3x3 / stride 1 / pad 1 max pool (separable) on the flat lane axis.
    cols = jax.lax.broadcasted_iota(jnp.int32, (1, P), 1) % W

    def shl(v, k):  # out[p] = v[p + k]
        return jnp.concatenate(
            [v[:, k:], jnp.full((v.shape[0], k), _NEG, v.dtype)], axis=1)

    def shr(v, k):  # out[p] = v[p - k]
        return jnp.concatenate(
            [jnp.full((v.shape[0], k), _NEG, v.dtype), v[:, :P - k]], axis=1)

    left = jnp.where(cols >= 1, shr(x, 1), _NEG)        # source col w-1
    right = jnp.where(cols <= W - 2, shl(x, 1), _NEG)   # source col w+1
    hmax = jnp.maximum(x, jnp.maximum(left, right))
    pooled = jnp.maximum(hmax, jnp.maximum(shr(hmax, W), shl(hmax, W)))

    y4 = jnp.dot(w4_ref[...], pooled.astype(jnp.bfloat16),
                 preferred_element_type=jnp.float32)

    y_all = jnp.concatenate([y_cat, y4], axis=0)        # (Cs1, P) f32
    y_ref[0] = y_all
    sum_ref[0] = jnp.sum(y_all, axis=1, keepdims=True)
    sq_ref[0] = jnp.sum(y_all * y_all, axis=1, keepdims=True)


def _conv3x3_kernel(yin_ref, scale_ref, off_ref, w_ref, y_ref, sum_ref, sq_ref,
                    col_ref, *, c_lo, cin, H, W):
    """3x3 / stride 1 / pad 1 conv for one image.
    Input = RAW output of the producer conv; the producer's BatchNorm affine
    (+ReLU) is fused here.  Padding is realized with flat lane shifts + column
    masks into an in-VMEM im2col scratch; one bf16 matmul with K = 9*Cin."""
    P = H * W
    a = yin_ref[0, c_lo:c_lo + cin, :]                           # (cin, P) f32 raw
    a = jnp.maximum(a * scale_ref[...] + off_ref[...], 0.0)      # producer BN+ReLU

    cols = jax.lax.broadcasted_iota(jnp.int32, (1, P), 1) % W
    # Pre-mask (in source coordinates) the columns that would wrap across rows
    # after a flat lane shift; together with the zero fill of the shift this is
    # exactly the 1-pixel zero padding.
    a_dx = (jnp.where(cols <= W - 2, a, 0.0),   # dx = 0  (uses source col w-1)
            a,                                   # dx = 1
            jnp.where(cols >= 1, a, 0.0))        # dx = 2  (uses source col w+1)

    col_ref[...] = jnp.zeros_like(col_ref)
    for dy in range(3):
        for dx in range(3):
            tap = dy * 3 + dx
            d = (dy - 1) * W + (dx - 1)          # flat source offset of this tap
            src = a_dx[dx]
            r0 = tap * cin
            if d == 0:
                col_ref[r0:r0 + cin, :] = src.astype(jnp.bfloat16)
            elif d > 0:                          # out[p] = src[p + d]
                col_ref[r0:r0 + cin, 0:P - d] = src[:, d:P].astype(jnp.bfloat16)
            else:                                # out[p] = src[p + d], d < 0
                k = -d
                col_ref[r0:r0 + cin, k:P] = src[:, 0:P - k].astype(jnp.bfloat16)

    y = jnp.dot(w_ref[...], col_ref[...], preferred_element_type=jnp.float32)
    y_ref[0] = y
    sum_ref[0] = jnp.sum(y, axis=1, keepdims=True)
    sq_ref[0] = jnp.sum(y * y, axis=1, keepdims=True)


def _finalize_kernel(ys1_ref, y2_ref, y3_ref, sc_ref, of_ref, out_ref, *, c1, c4_lo):
    """Fused final BatchNorm affine + ReLU of all four branches + channel concat.
    Writes the NCHW result directly (lane-dense 256-wide stores)."""
    c2 = y2_ref.shape[1]
    c3 = y3_ref.shape[1]
    ct = out_ref.shape[1]
    c4 = ct - c1 - c2 - c3

    def bn_relu(y, lo, hi):
        return jnp.maximum(y * sc_ref[lo:hi, :] + of_ref[lo:hi, :], 0.0)

    out_ref[0, 0:c1, :] = bn_relu(ys1_ref[0, 0:c1, :], 0, c1)
    out_ref[0, c1:c1 + c2, :] = bn_relu(y2_ref[0], c1, c1 + c2)
    out_ref[0, c1 + c2:c1 + c2 + c3, :] = bn_relu(y3_ref[0], c1 + c2, c1 + c2 + c3)
    out_ref[0, c1 + c2 + c3:ct, :] = bn_relu(ys1_ref[0, c4_lo:c4_lo + c4, :],
                                             c1 + c2 + c3, ct)


# ----------------------------------------------------------------------------
# pallas_call wrappers
# ----------------------------------------------------------------------------
# TODO(synk): for large H*W, split the spatial axis into row blocks (with a
# one-row halo for the 3x3 convs) to bound per-step VMEM and add pipeline depth;
# here one image per grid step is tiny and fits comfortably.
def _stage1(x, wcat, w4, H, W):
    N, cin, P = x.shape
    ccat3, c4 = wcat.shape[0], w4.shape[0]
    cs1 = ccat3 + c4
    kern = functools.partial(_stage1_kernel, H=H, W=W)
    ce = pl.CostEstimate(
        flops=2 * N * P * cin * cs1 + 9 * N * cin * P,
        transcendentals=0,
        bytes_accessed=x.size * 4 + N * cs1 * P * 4 + (wcat.size + w4.size) * 2)
    return pl.pallas_call(
        kern,
        out_shape=(
            jax.ShapeDtypeStruct((N, cs1, P), jnp.float32),
            jax.ShapeDtypeStruct((N, cs1, 1), jnp.float32),
            jax.ShapeDtypeStruct((N, cs1, 1), jnp.float32),
        ),
        grid=(N,),
        in_specs=[
            pl.BlockSpec((1, cin, P), lambda n: (n, 0, 0)),
            pl.BlockSpec((ccat3, cin), lambda n: (0, 0)),
            pl.BlockSpec((c4, cin), lambda n: (0, 0)),
        ],
        out_specs=(
            pl.BlockSpec((1, cs1, P), lambda n: (n, 0, 0)),
            pl.BlockSpec((1, cs1, 1), lambda n: (n, 0, 0)),
            pl.BlockSpec((1, cs1, 1), lambda n: (n, 0, 0)),
        ),
        compiler_params=pltpu.CompilerParams(dimension_semantics=("parallel",)),
        cost_estimate=ce,
    )(x, wcat, w4)


def _conv3x3(y_in, scale, offset, w_packed, *, c_lo, cin, H, W):
    N, cin_total, P = y_in.shape
    cout = w_packed.shape[0]
    kern = functools.partial(_conv3x3_kernel, c_lo=c_lo, cin=cin, H=H, W=W)
    ce = pl.CostEstimate(
        flops=2 * N * P * (9 * cin) * cout,
        transcendentals=0,
        bytes_accessed=N * cin_total * P * 4 + N * cout * P * 4 + w_packed.size * 2)
    return pl.pallas_call(
        kern,
        out_shape=(
            jax.ShapeDtypeStruct((N, cout, P), jnp.float32),
            jax.ShapeDtypeStruct((N, cout, 1), jnp.float32),
            jax.ShapeDtypeStruct((N, cout, 1), jnp.float32),
        ),
        grid=(N,),
        in_specs=[
            # Full channel block; the needed channel window is sliced in-kernel
            # (static) to keep the BlockSpec (8,128)-legal for any channel split.
            pl.BlockSpec((1, cin_total, P), lambda n: (n, 0, 0)),
            pl.BlockSpec((cin, 1), lambda n: (0, 0)),
            pl.BlockSpec((cin, 1), lambda n: (0, 0)),
            pl.BlockSpec((cout, 9 * cin), lambda n: (0, 0)),
        ],
        out_specs=(
            pl.BlockSpec((1, cout, P), lambda n: (n, 0, 0)),
            pl.BlockSpec((1, cout, 1), lambda n: (n, 0, 0)),
            pl.BlockSpec((1, cout, 1), lambda n: (n, 0, 0)),
        ),
        scratch_shapes=[pltpu.VMEM((9 * cin, P), jnp.bfloat16)],
        compiler_params=pltpu.CompilerParams(dimension_semantics=("parallel",)),
        cost_estimate=ce,
    )(y_in, scale, offset, w_packed)


def _finalize(y_s1, y2, y3, sc, of, *, c1, c4_lo):
    N, cs1, P = y_s1.shape
    c2, c3 = y2.shape[1], y3.shape[1]
    ct = sc.shape[0]
    kern = functools.partial(_finalize_kernel, c1=c1, c4_lo=c4_lo)
    return pl.pallas_call(
        kern,
        out_shape=jax.ShapeDtypeStruct((N, ct, P), jnp.float32),
        grid=(N,),
        in_specs=[
            pl.BlockSpec((1, cs1, P), lambda n: (n, 0, 0)),
            pl.BlockSpec((1, c2, P), lambda n: (n, 0, 0)),
            pl.BlockSpec((1, c3, P), lambda n: (n, 0, 0)),
            pl.BlockSpec((ct, 1), lambda n: (0, 0)),
            pl.BlockSpec((ct, 1), lambda n: (0, 0)),
        ],
        out_specs=pl.BlockSpec((1, ct, P), lambda n: (n, 0, 0)),
        compiler_params=pltpu.CompilerParams(dimension_semantics=("parallel",)),
    )(y_s1, y2, y3, sc, of)


# ----------------------------------------------------------------------------
# Helpers (tiny JAX-side math)
# ----------------------------------------------------------------------------
def _bn_affine(sum_part, sq_part, m, gamma, beta):
    """Fold training-mode BatchNorm (batch statistics over M = N*H*W) into a
    per-channel affine (scale, offset), both (C, 1) f32."""
    s = jnp.sum(sum_part, axis=0)                       # (C, 1)
    q = jnp.sum(sq_part, axis=0)
    mean = s / m
    var = jnp.maximum(q / m - mean * mean, 0.0)         # biased batch variance
    scale = gamma[:, None] * jax.lax.rsqrt(var + BN_EPS)
    offset = beta[:, None] - mean * scale
    return scale, offset


def _pack_w3(w):  # (Cout, Cin, 3, 3) -> (Cout, 9*Cin) bf16, tap-major rows
    cout, cin = w.shape[0], w.shape[1]
    return jnp.transpose(w, (0, 2, 3, 1)).reshape(cout, 9 * cin).astype(jnp.bfloat16)


# ----------------------------------------------------------------------------
# Inception forward
# ----------------------------------------------------------------------------
def inception_forward(x_nchw, params):
    N, cin, H, W = x_nchw.shape
    P = H * W
    M = N * P
    x = x_nchw.reshape(N, cin, P)                       # NCHW kept; free reshape

    # Conv biases are intentionally unused: under batch-statistics BatchNorm the
    # bias is absorbed by the mean and cancels exactly.
    w1, _, g1, be1 = params["b1"]
    w2a, _, g2a, be2a = params["b2_1x1_a"]
    w3a, _, g3a, be3a = params["b3_1x1_a"]
    w4, _, g4, be4 = params["b4_1x1"]
    c1, c2r, c3r, c4 = w1.shape[0], w2a.shape[0], w3a.shape[0], w4.shape[0]
    ccat3 = c1 + c2r + c3r
    cs1 = ccat3 + c4

    # ---- stage 1: fused 1x1 convs on x + (maxpool -> 1x1 conv) ----
    wcat = jnp.concatenate(
        [w1[:, :, 0, 0], w2a[:, :, 0, 0], w3a[:, :, 0, 0]], axis=0
    ).astype(jnp.bfloat16)
    w4m = w4[:, :, 0, 0].astype(jnp.bfloat16)
    y_s1, s_s1, q_s1 = _stage1(x, wcat, w4m, H, W)

    g_s1 = jnp.concatenate([g1, g2a, g3a, g4])
    be_s1 = jnp.concatenate([be1, be2a, be3a, be4])
    sc_s1, of_s1 = _bn_affine(s_s1, q_s1, M, g_s1, be_s1)

    # ---- branch 2: 1x1 (stage 1) -> 3x3 (producer BN+ReLU fused in) ----
    w2b, _, g2b, be2b = params["b2_3x3_b"]
    y2, s2, q2 = _conv3x3(y_s1, sc_s1[c1:c1 + c2r], of_s1[c1:c1 + c2r],
                          _pack_w3(w2b), c_lo=c1, cin=c2r, H=H, W=W)
    sc2, of2 = _bn_affine(s2, q2, M, g2b, be2b)

    # ---- branch 3: 1x1 (stage 1) -> 3x3 -> 3x3 ----
    w3b, _, g3b, be3b = params["b3_3x3_b"]
    y3b, s3b, q3b = _conv3x3(y_s1, sc_s1[c1 + c2r:ccat3], of_s1[c1 + c2r:ccat3],
                             _pack_w3(w3b), c_lo=c1 + c2r, cin=c3r, H=H, W=W)
    sc3b, of3b = _bn_affine(s3b, q3b, M, g3b, be3b)

    w3c, _, g3c, be3c = params["b3_3x3_c"]
    n5 = w3c.shape[1]
    y3, s3, q3 = _conv3x3(y3b, sc3b, of3b, _pack_w3(w3c),
                          c_lo=0, cin=n5, H=H, W=W)
    sc3, of3 = _bn_affine(s3, q3, M, g3c, be3c)

    # ---- fused final BN+ReLU + channel concat, direct NCHW output ----
    sc_out = jnp.concatenate([sc_s1[0:c1], sc2, sc3, sc_s1[ccat3:cs1]], axis=0)
    of_out = jnp.concatenate([of_s1[0:c1], of2, of3, of_s1[ccat3:cs1]], axis=0)
    out = _finalize(y_s1, y2, y3, sc_out, of_out, c1=c1, c4_lo=ccat3)
    return out.reshape(N, out.shape[1], H, W)


# ----------------------------------------------------------------------------
# Deterministic parameter construction
# ----------------------------------------------------------------------------
def _make_basic_conv_params(key, cin, cout, ksize):
    kw, kb, kg, kbeta = jax.random.split(key, 4)
    w = 0.1 * jax.random.normal(kw, (cout, cin, ksize, ksize), jnp.float32)
    b = 0.1 * jax.random.normal(kb, (cout,), jnp.float32)
    gamma = 1.0 + 0.1 * jax.random.normal(kg, (cout,), jnp.float32)
    beta = 0.1 * jax.random.normal(kbeta, (cout,), jnp.float32)
    return (w, b, gamma, beta)


def make_inception_params(key, in_planes, n1x1, n3x3red, n3x3, n5x5red, n5x5,
                          pool_planes):
    keys = jax.random.split(key, 7)
    return {
        "b1": _make_basic_conv_params(keys[0], in_planes, n1x1, 1),
        "b2_1x1_a": _make_basic_conv_params(keys[1], in_planes, n3x3red, 1),
        "b2_3x3_b": _make_basic_conv_params(keys[2], n3x3red, n3x3, 3),
        "b3_1x1_a": _make_basic_conv_params(keys[3], in_planes, n5x5red, 1),
        "b3_3x3_b": _make_basic_conv_params(keys[4], n5x5red, n5x5, 3),
        "b3_3x3_c": _make_basic_conv_params(keys[5], n5x5, n5x5, 3),
        "b4_1x1": _make_basic_conv_params(keys[6], in_planes, pool_planes, 1),
    }


if __name__ == "__main__":
    key = jax.random.PRNGKey(0)
    kx, kp = jax.random.split(key)

    # Small Inception config: 4 -> (8, 8, 8, 8) => 32 output channels.
    in_planes, n1x1, n3x3red, n3x3, n5x5red, n5x5, pool_planes = 4, 8, 4, 8, 4, 8, 8
    params = make_inception_params(kp, in_planes, n1x1, n3x3red, n3x3,
                                   n5x5red, n5x5, pool_planes)

    x = jax.random.normal(kx, (2, in_planes, 16, 16), jnp.float32)  # NCHW

    y = jax.jit(inception_forward)(x, params)
    y = jax.block_until_ready(y)

    expected = (2, n1x1 + n3x3 + n5x5 + pool_planes, 16, 16)
    assert y.shape == expected, (y.shape, expected)
    assert bool(jnp.all(jnp.isfinite(y)))
    assert bool(jnp.all(y >= 0.0))  # ReLU output
    print("KERNEL_OK")
</pallas_src>

<mosaic_0001>
module attributes {stable_mosaic.version = 11 : i64} {
  func.func @_stage1_kernel(%arg0: i32, %arg1: memref<1x4x256xf32, #tpu.memory_space<vmem>>, %arg2: memref<16x4xbf16, #tpu.memory_space<vmem>>, %arg3: memref<8x4xbf16, #tpu.memory_space<vmem>>, %arg4: memref<1x24x256xf32, #tpu.memory_space<vmem>>, %arg5: memref<1x24x1xf32, #tpu.memory_space<vmem>>, %arg6: memref<1x24x1xf32, #tpu.memory_space<vmem>>) attributes {dimension_semantics = [#tpu.dimension_semantics<parallel>], iteration_bounds = array<i64: 2>, scalar_prefetch = 0 : i64, scratch_operands = 0 : i64, tpu.core_type = #tpu.core_type<tc>, window_params = [{transform_indices = @transform_0, window_bounds = array<i64: 1, 4, 256>}, {pipeline_mode = #tpu.pipeline_mode<synchronous>, transform_indices = @transform_1, window_bounds = array<i64: 16, 4>}, {pipeline_mode = #tpu.pipeline_mode<synchronous>, transform_indices = @transform_2, window_bounds = array<i64: 8, 4>}, {transform_indices = @transform_3, window_bounds = array<i64: 1, 24, 256>}, {transform_indices = @transform_4, window_bounds = array<i64: 1, 24, 1>}, {transform_indices = @transform_5, window_bounds = array<i64: 1, 24, 1>}]} {
    %c0 = arith.constant 0 : index
    %c0_0 = arith.constant 0 : index
    %c0_1 = arith.constant 0 : index
    %0 = vector.load %arg1[%c0, %c0_0, %c0_1] : memref<1x4x256xf32, #tpu.memory_space<vmem>>, vector<1x4x256xf32>
    %1 = vector.shape_cast %0 : vector<1x4x256xf32> to vector<4x256xf32>
    %2 = arith.truncf %1 : vector<4x256xf32> to vector<4x256xbf16>
    %c0_2 = arith.constant 0 : index
    %c0_3 = arith.constant 0 : index
    %3 = vector.load %arg2[%c0_2, %c0_3] : memref<16x4xbf16, #tpu.memory_space<vmem>>, vector<16x4xbf16>
    %cst = arith.constant dense<0.000000e+00> : vector<16x256xf32>
    %4 = tpu.matmul %3, %2, %cst {dimension_numbers = #tpu.dot_dimension_numbers<[1], [0], [0], [1], [0, 0, 1, 1], [], []>} : vector<16x4xbf16>, vector<4x256xbf16>, vector<16x256xf32> -> vector<16x256xf32>
    %5 = tpu.iota {dimensions = array<i32: 1>} : vector<1x256xi32>
    %c16_i32 = arith.constant 16 : i32
    %c0_i32 = arith.constant 0 : i32
    %6 = arith.cmpi eq, %c16_i32, %c0_i32 : i32
    %c1_i32 = arith.constant 1 : i32
    %7 = arith.select %6, %c1_i32, %c16_i32 : i32
    %8 = vector.broadcast %7 : i32 to vector<1x256xi32>
    %9 = arith.remsi %5, %8 : vector<1x256xi32>
    %c0_i32_4 = arith.constant 0 : i32
    %10 = vector.broadcast %c0_i32_4 : i32 to vector<1x256xi32>
    %11 = arith.cmpi ne, %9, %10 : vector<1x256xi32>
    %c0_i32_5 = arith.constant 0 : i32
    %12 = vector.broadcast %c0_i32_5 : i32 to vector<1x256xi32>
    %13 = arith.cmpi slt, %9, %12 : vector<1x256xi32>
    %c0_i32_6 = arith.constant 0 : i32
    %14 = arith.cmpi slt, %7, %c0_i32_6 : i32
    %15 = vector.broadcast %14 : i1 to vector<1x256xi1>
    %16 = vector.broadcast %15 : vector<1x256xi1> to vector<1x256xi1>
    %17 = arith.xori %13, %16 : vector<1x256xi1>
    %18 = arith.andi %17, %11 : vector<1x256xi1>
    %19 = vector.broadcast %7 : i32 to vector<1x256xi32>
    %20 = arith.addi %9, %19 : vector<1x256xi32>
    %21 = arith.select %18, %20, %9 : vector<1x256xi1>, vector<1x256xi32>
    %c1_i32_7 = arith.constant 1 : i32
    %22 = vector.broadcast %c1_i32_7 : i32 to vector<1x256xi32>
    %23 = arith.cmpi sge, %21, %22 : vector<1x256xi32>
    %cst_8 = arith.constant -1.000000e+30 : f32
    %24 = vector.broadcast %cst_8 : f32 to vector<4x1xf32>
    %25 = vector.extract_strided_slice %1 {offsets = [0, 0], sizes = [4, 255], strides = [1, 1]} : vector<4x256xf32> to vector<4x255xf32>
    %26 = tpu.concatenate %24, %25 in 1 : vector<4x1xf32>, vector<4x255xf32> -> vector<4x256xf32>
    %cst_9 = arith.constant -1.000000e+30 : f32
    %27 = vector.shape_cast %23 : vector<1x256xi1> to vector<1x256xi1>
    %28 = vector.broadcast %27 : vector<1x256xi1> to vector<4x256xi1>
    %29 = vector.broadcast %cst_9 : f32 to vector<4x256xf32>
    %30 = arith.select %28, %26, %29 : vector<4x256xi1>, vector<4x256xf32>
    %c14_i32 = arith.constant 14 : i32
    %31 = vector.broadcast %c14_i32 : i32 to vector<1x256xi32>
    %32 = arith.cmpi sle, %21, %31 : vector<1x256xi32>
    %33 = vector.extract_strided_slice %1 {offsets = [0, 1], sizes = [4, 255], strides = [1, 1]} : vector<4x256xf32> to vector<4x255xf32>
    %cst_10 = arith.constant -1.000000e+30 : f32
    %34 = vector.broadcast %cst_10 : f32 to vector<4x1xf32>
    %35 = tpu.concatenate %33, %34 in 1 : vector<4x255xf32>, vector<4x1xf32> -> vector<4x256xf32>
    %cst_11 = arith.constant -1.000000e+30 : f32
    %36 = vector.shape_cast %32 : vector<1x256xi1> to vector<1x256xi1>
    %37 = vector.broadcast %36 : vector<1x256xi1> to vector<4x256xi1>
    %38 = vector.broadcast %cst_11 : f32 to vector<4x256xf32>
    %39 = arith.select %37, %35, %38 : vector<4x256xi1>, vector<4x256xf32>
    %40 = arith.maximumf %30, %39 : vector<4x256xf32>
    %41 = arith.maximumf %1, %40 : vector<4x256xf32>
    %cst_12 = arith.constant -1.000000e+30 : f32
    %42 = vector.broadcast %cst_12 : f32 to vector<4x16xf32>
    %43 = vector.extract_strided_slice %41 {offsets = [0, 0], sizes = [4, 240], strides = [1, 1]} : vector<4x256xf32> to vector<4x240xf32>
    %44 = tpu.concatenate %42, %43 in 1 : vector<4x16xf32>, vector<4x240xf32> -> vector<4x256xf32>
    %45 = vector.extract_strided_slice %41 {offsets = [0, 16], sizes = [4, 240], strides = [1, 1]} : vector<4x256xf32> to vector<4x240xf32>
    %cst_13 = arith.constant -1.000000e+30 : f32
    %46 = vector.broadcast %cst_13 : f32 to vector<4x16xf32>
    %47 = tpu.concatenate %45, %46 in 1 : vector<4x240xf32>, vector<4x16xf32> -> vector<4x256xf32>
    %48 = arith.maximumf %44, %47 : vector<4x256xf32>
    %49 = arith.maximumf %41, %48 : vector<4x256xf32>
    %c0_14 = arith.constant 0 : index
    %c0_15 = arith.constant 0 : index
    %50 = vector.load %arg3[%c0_14, %c0_15] : memref<8x4xbf16, #tpu.memory_space<vmem>>, vector<8x4xbf16>
    %51 = arith.truncf %49 : vector<4x256xf32> to vector<4x256xbf16>
    %cst_16 = arith.constant dense<0.000000e+00> : vector<8x256xf32>
    %52 = tpu.matmul %50, %51, %cst_16 {dimension_numbers = #tpu.dot_dimension_numbers<[1], [0], [0], [1], [0, 0, 1, 1], [], []>} : vector<8x4xbf16>, vector<4x256xbf16>, vector<8x256xf32> -> vector<8x256xf32>
    %53 = tpu.concatenate %4, %52 in 0 : vector<16x256xf32>, vector<8x256xf32> -> vector<24x256xf32>
    %c0_17 = arith.constant 0 : index
    %c0_18 = arith.constant 0 : index
    %c0_19 = arith.constant 0 : index
    %54 = vector.load %arg4[%c0_17, %c0_18, %c0_19] : memref<1x24x256xf32, #tpu.memory_space<vmem>>, vector<1x24x256xf32>
    %55 = vector.shape_cast %54 : vector<1x24x256xf32> to vector<24x256xf32>
    %56 = vector.shape_cast %53 : vector<24x256xf32> to vector<1x24x256xf32>
    tpu.vector_store %arg4[%c0_17, %c0_18, %c0_19], %56 {strides = array<i32>} : memref<1x24x256xf32, #tpu.memory_space<vmem>>, vector<1x24x256xf32>,
    %cst_20 = arith.constant dense<0.000000e+00> : vector<24xf32>
    %57 = vector.multi_reduction <add>, %53, %cst_20 [1] : vector<24x256xf32> to vector<24xf32>
    %58 = vector.shape_cast %57 : vector<24xf32> to vector<24x1xf32>
    %c0_21 = arith.constant 0 : index
    %c0_22 = arith.constant 0 : index
    %c0_23 = arith.constant 0 : index
    %59 = vector.load %arg5[%c0_21, %c0_22, %c0_23] : memref<1x24x1xf32, #tpu.memory_space<vmem>>, vector<1x24x1xf32>
    %60 = vector.shape_cast %59 : vector<1x24x1xf32> to vector<24x1xf32>
    %61 = vector.shape_cast %58 : vector<24x1xf32> to vector<1x24x1xf32>
    tpu.vector_store %arg5[%c0_21, %c0_22, %c0_23], %61 {strides = array<i32>} : memref<1x24x1xf32, #tpu.memory_space<vmem>>, vector<1x24x1xf32>,
    %62 = arith.mulf %53, %53 : vector<24x256xf32>
    %cst_24 = arith.constant dense<0.000000e+00> : vector<24xf32>
    %63 = vector.multi_reduction <add>, %62, %cst_24 [1] : vector<24x256xf32> to vector<24xf32>
    %64 = vector.shape_cast %63 : vector<24xf32> to vector<24x1xf32>
    %c0_25 = arith.constant 0 : index
    %c0_26 = arith.constant 0 : index
    %c0_27 = arith.constant 0 : index
    %65 = vector.load %arg6[%c0_25, %c0_26, %c0_27] : memref<1x24x1xf32, #tpu.memory_space<vmem>>, vector<1x24x1xf32>
    %66 = vector.shape_cast %65 : vector<1x24x1xf32> to vector<24x1xf32>
    %67 = vector.shape_cast %64 : vector<24x1xf32> to vector<1x24x1xf32>
    tpu.vector_store %arg6[%c0_25, %c0_26, %c0_27], %67 {strides = array<i32>} : memref<1x24x1xf32, #tpu.memory_space<vmem>>, vector<1x24x1xf32>,
    return
  }
  func.func @transform_0(%arg0: i32) -> (i32, i32, i32) {
    %c0_i32 = arith.constant 0 : i32
    %c0_i32_0 = arith.constant 0 : i32
    %c0_i32_1 = arith.constant 0 : i32
    return %arg0, %c0_i32, %c0_i32_0 : i32, i32, i32
  }
  func.func @transform_1(%arg0: i32) -> (i32, i32) {
    %c0_i32 = arith.constant 0 : i32
    %c0_i32_0 = arith.constant 0 : i32
    %c0_i32_1 = arith.constant 0 : i32
    return %c0_i32, %c0_i32_0 : i32, i32
  }
  func.func @transform_2(%arg0: i32) -> (i32, i32) {
    %c0_i32 = arith.constant 0 : i32
    %c0_i32_0 = arith.constant 0 : i32
    %c0_i32_1 = arith.constant 0 : i32
    return %c0_i32, %c0_i32_0 : i32, i32
  }
  func.func @transform_3(%arg0: i32) -> (i32, i32, i32) {
    %c0_i32 = arith.constant 0 : i32
    %c0_i32_0 = arith.constant 0 : i32
    %c0_i32_1 = arith.constant 0 : i32
    return %arg0, %c0_i32, %c0_i32_0 : i32, i32, i32
  }
  func.func @transform_4(%arg0: i32) -> (i32, i32, i32) {
    %c0_i32 = arith.constant 0 : i32
    %c0_i32_0 = arith.constant 0 : i32
    %c0_i32_1 = arith.constant 0 : i32
    return %arg0, %c0_i32, %c0_i32_0 : i32, i32, i32
  }
  func.func @transform_5(%arg0: i32) -> (i32, i32, i32) {
    %c0_i32 = arith.constant 0 : i32
    %c0_i32_0 = arith.constant 0 : i32
    %c0_i32_1 = arith.constant 0 : i32
    return %arg0, %c0_i32, %c0_i32_0 : i32, i32, i32
  }
}

module attributes {stable_mosaic.version = 11 : i64} {
  func.func @_conv3x3_kernel(%arg0: i32, %arg1: memref<1x24x256xf32, #tpu.memory_space<vmem>>, %arg2: memref<4x1xf32, #tpu.memory_space<vmem>>, %arg3: memref<4x1xf32, #tpu.memory_space<vmem>>, %arg4: memref<8x36xbf16, #tpu.memory_space<vmem>>, %arg5: memref<1x8x256xf32, #tpu.memory_space<vmem>>, %arg6: memref<1x8x1xf32, #tpu.memory_space<vmem>>, %arg7: memref<1x8x1xf32, #tpu.memory_space<vmem>>, %arg8: memref<36x256xbf16, #tpu.memory_space<vmem>>) attributes {dimension_semantics = [#tpu.dimension_semantics<parallel>], iteration_bounds = array<i64: 2>, scalar_prefetch = 0 : i64, scratch_operands = 1 : i64, tpu.core_type = #tpu.core_type<tc>, window_params = [{transform_indices = @transform_0, window_bounds = array<i64: 1, 24, 256>}, {pipeline_mode = #tpu.pipeline_mode<synchronous>, transform_indices = @transform_1, window_bounds = array<i64: 4, 1>}, {pipeline_mode = #tpu.pipeline_mode<synchronous>, transform_indices = @transform_2, window_bounds = array<i64: 4, 1>}, {pipeline_mode = #tpu.pipeline_mode<synchronous>, transform_indices = @transform_3, window_bounds = array<i64: 8, 36>}, {transform_indices = @transform_4, window_bounds = array<i64: 1, 8, 256>}, {transform_indices = @transform_5, window_bounds = array<i64: 1, 8, 1>}, {transform_indices = @transform_6, window_bounds = array<i64: 1, 8, 1>}]} {
    %c0 = arith.constant 0 : index
    %c12 = arith.constant 12 : index
    %c0_0 = arith.constant 0 : index
    %0 = vector.load %arg1[%c0, %c12, %c0_0] : memref<1x24x256xf32, #tpu.memory_space<vmem>>, vector<1x4x256xf32>
    %1 = vector.shape_cast %0 : vector<1x4x256xf32> to vector<4x256xf32>
    %c0_1 = arith.constant 0 : index
    %c0_2 = arith.constant 0 : index
    %2 = vector.load %arg2[%c0_1, %c0_2] : memref<4x1xf32, #tpu.memory_space<vmem>>, vector<4x1xf32>
    %3 = vector.broadcast %2 : vector<4x1xf32> to vector<4x256xf32>
    %4 = arith.mulf %1, %3 : vector<4x256xf32>
    %c0_3 = arith.constant 0 : index
    %c0_4 = arith.constant 0 : index
    %5 = vector.load %arg3[%c0_3, %c0_4] : memref<4x1xf32, #tpu.memory_space<vmem>>, vector<4x1xf32>
    %6 = vector.broadcast %5 : vector<4x1xf32> to vector<4x256xf32>
    %7 = arith.addf %4, %6 : vector<4x256xf32>
    %cst = arith.constant 0.000000e+00 : f32
    %8 = vector.broadcast %cst : f32 to vector<4x256xf32>
    %9 = arith.maximumf %7, %8 : vector<4x256xf32>
    %10 = tpu.iota {dimensions = array<i32: 1>} : vector<1x256xi32>
    %c16_i32 = arith.constant 16 : i32
    %c0_i32 = arith.constant 0 : i32
    %11 = arith.cmpi eq, %c16_i32, %c0_i32 : i32
    %c1_i32 = arith.constant 1 : i32
    %12 = arith.select %11, %c1_i32, %c16_i32 : i32
    %13 = vector.broadcast %12 : i32 to vector<1x256xi32>
    %14 = arith.remsi %10, %13 : vector<1x256xi32>
    %c0_i32_5 = arith.constant 0 : i32
    %15 = vector.broadcast %c0_i32_5 : i32 to vector<1x256xi32>
    %16 = arith.cmpi ne, %14, %15 : vector<1x256xi32>
    %c0_i32_6 = arith.constant 0 : i32
    %17 = vector.broadcast %c0_i32_6 : i32 to vector<1x256xi32>
    %18 = arith.cmpi slt, %14, %17 : vector<1x256xi32>
    %c0_i32_7 = arith.constant 0 : i32
    %19 = arith.cmpi slt, %12, %c0_i32_7 : i32
    %20 = vector.broadcast %19 : i1 to vector<1x256xi1>
    %21 = vector.broadcast %20 : vector<1x256xi1> to vector<1x256xi1>
    %22 = arith.xori %18, %21 : vector<1x256xi1>
    %23 = arith.andi %22, %16 : vector<1x256xi1>
    %24 = vector.broadcast %12 : i32 to vector<1x256xi32>
    %25 = arith.addi %14, %24 : vector<1x256xi32>
    %26 = arith.select %23, %25, %14 : vector<1x256xi1>, vector<1x256xi32>
    %c14_i32 = arith.constant 14 : i32
    %27 = vector.broadcast %c14_i32 : i32 to vector<1x256xi32>
    %28 = arith.cmpi sle, %26, %27 : vector<1x256xi32>
    %cst_8 = arith.constant 0.000000e+00 : f32
    %29 = vector.shape_cast %28 : vector<1x256xi1> to vector<1x256xi1>
    %30 = vector.broadcast %29 : vector<1x256xi1> to vector<4x256xi1>
    %31 = vector.broadcast %cst_8 : f32 to vector<4x256xf32>
    %32 = arith.select %30, %9, %31 : vector<4x256xi1>, vector<4x256xf32>
    %c1_i32_9 = arith.constant 1 : i32
    %33 = vector.broadcast %c1_i32_9 : i32 to vector<1x256xi32>
    %34 = arith.cmpi sge, %26, %33 : vector<1x256xi32>
    %cst_10 = arith.constant 0.000000e+00 : f32
    %35 = vector.shape_cast %34 : vector<1x256xi1> to vector<1x256xi1>
    %36 = vector.broadcast %35 : vector<1x256xi1> to vector<4x256xi1>
    %37 = vector.broadcast %cst_10 : f32 to vector<4x256xf32>
    %38 = arith.select %36, %9, %37 : vector<4x256xi1>, vector<4x256xf32>
    %cst_11 = arith.constant 0.000000e+00 : bf16
    %39 = vector.broadcast %cst_11 : bf16 to vector<36x256xbf16>
    %c0_12 = arith.constant 0 : index
    %c0_13 = arith.constant 0 : index
    %40 = vector.load %arg8[%c0_12, %c0_13] : memref<36x256xbf16, #tpu.memory_space<vmem>>, vector<36x256xbf16>
    tpu.vector_store %arg8[%c0_12, %c0_13], %39 {strides = array<i32>} : memref<36x256xbf16, #tpu.memory_space<vmem>>, vector<36x256xbf16>,
    %41 = vector.extract_strided_slice %32 {offsets = [0, 0], sizes = [4, 239], strides = [1, 1]} : vector<4x256xf32> to vector<4x239xf32>
    %42 = arith.truncf %41 : vector<4x239xf32> to vector<4x239xbf16>
    %c0_14 = arith.constant 0 : index
    %c17 = arith.constant 17 : index
    %43 = vector.load %arg8[%c0_14, %c17] : memref<36x256xbf16, #tpu.memory_space<vmem>>, vector<4x239xbf16>
    tpu.vector_store %arg8[%c0_14, %c17], %42 {strides = array<i32>} : memref<36x256xbf16, #tpu.memory_space<vmem>>, vector<4x239xbf16>,
    %44 = vector.extract_strided_slice %9 {offsets = [0, 0], sizes = [4, 240], strides = [1, 1]} : vector<4x256xf32> to vector<4x240xf32>
    %45 = arith.truncf %44 : vector<4x240xf32> to vector<4x240xbf16>
    %c4 = arith.constant 4 : index
    %c16 = arith.constant 16 : index
    %46 = vector.load %arg8[%c4, %c16] : memref<36x256xbf16, #tpu.memory_space<vmem>>, vector<4x240xbf16>
    tpu.vector_store %arg8[%c4, %c16], %45 {strides = array<i32>} : memref<36x256xbf16, #tpu.memory_space<vmem>>, vector<4x240xbf16>,
    %47 = vector.extract_strided_slice %38 {offsets = [0, 0], sizes = [4, 241], strides = [1, 1]} : vector<4x256xf32> to vector<4x241xf32>
    %48 = arith.truncf %47 : vector<4x241xf32> to vector<4x241xbf16>
    %c8 = arith.constant 8 : index
    %c15 = arith.constant 15 : index
    %49 = vector.load %arg8[%c8, %c15] : memref<36x256xbf16, #tpu.memory_space<vmem>>, vector<4x241xbf16>
    tpu.vector_store %arg8[%c8, %c15], %48 {strides = array<i32>} : memref<36x256xbf16, #tpu.memory_space<vmem>>, vector<4x241xbf16>,
    %50 = vector.extract_strided_slice %32 {offsets = [0, 0], sizes = [4, 255], strides = [1, 1]} : vector<4x256xf32> to vector<4x255xf32>
    %51 = arith.truncf %50 : vector<4x255xf32> to vector<4x255xbf16>
    %c12_15 = arith.constant 12 : index
    %c1 = arith.constant 1 : index
    %52 = vector.load %arg8[%c12_15, %c1] : memref<36x256xbf16, #tpu.memory_space<vmem>>, vector<4x255xbf16>
    tpu.vector_store %arg8[%c12_15, %c1], %51 {strides = array<i32>} : memref<36x256xbf16, #tpu.memory_space<vmem>>, vector<4x255xbf16>,
    %53 = arith.truncf %9 : vector<4x256xf32> to vector<4x256xbf16>
    %c16_16 = arith.constant 16 : index
    %c0_17 = arith.constant 0 : index
    %54 = vector.load %arg8[%c16_16, %c0_17] : memref<36x256xbf16, #tpu.memory_space<vmem>>, vector<4x256xbf16>
    tpu.vector_store %arg8[%c16_16, %c0_17], %53 {strides = array<i32>} : memref<36x256xbf16, #tpu.memory_space<vmem>>, vector<4x256xbf16>,
    %55 = vector.extract_strided_slice %38 {offsets = [0, 1], sizes = [4, 255], strides = [1, 1]} : vector<4x256xf32> to vector<4x255xf32>
    %56 = arith.truncf %55 : vector<4x255xf32> to vector<4x255xbf16>
    %c20 = arith.constant 20 : index
    %c0_18 = arith.constant 0 : index
    %57 = vector.load %arg8[%c20, %c0_18] : memref<36x256xbf16, #tpu.memory_space<vmem>>, vector<4x255xbf16>
    tpu.vector_store %arg8[%c20, %c0_18], %56 {strides = array<i32>} : memref<36x256xbf16, #tpu.memory_space<vmem>>, vector<4x255xbf16>,
    %58 = vector.extract_strided_slice %32 {offsets = [0, 15], sizes = [4, 241], strides = [1, 1]} : vector<4x256xf32> to vector<4x241xf32>
    %59 = arith.truncf %58 : vector<4x241xf32> to vector<4x241xbf16>
    %c24 = arith.constant 24 : index
    %c0_19 = arith.constant 0 : index
    %60 = vector.load %arg8[%c24, %c0_19] : memref<36x256xbf16, #tpu.memory_space<vmem>>, vector<4x241xbf16>
    tpu.vector_store %arg8[%c24, %c0_19], %59 {strides = array<i32>} : memref<36x256xbf16, #tpu.memory_space<vmem>>, vector<4x241xbf16>,
    %61 = vector.extract_strided_slice %9 {offsets = [0, 16], sizes = [4, 240], strides = [1, 1]} : vector<4x256xf32> to vector<4x240xf32>
    %62 = arith.truncf %61 : vector<4x240xf32> to vector<4x240xbf16>
    %c28 = arith.constant 28 : index
    %c0_20 = arith.constant 0 : index
    %63 = vector.load %arg8[%c28, %c0_20] : memref<36x256xbf16, #tpu.memory_space<vmem>>, vector<4x240xbf16>
    tpu.vector_store %arg8[%c28, %c0_20], %62 {strides = array<i32>} : memref<36x256xbf16, #tpu.memory_space<vmem>>, vector<4x240xbf16>,
    %64 = vector.extract_strided_slice %38 {offsets = [0, 17], sizes = [4, 239], strides = [1, 1]} : vector<4x256xf32> to vector<4x239xf32>
    %65 = arith.truncf %64 : vector<4x239xf32> to vector<4x239xbf16>
    %c32 = arith.constant 32 : index
    %c0_21 = arith.constant 0 : index
    %66 = vector.load %arg8[%c32, %c0_21] : memref<36x256xbf16, #tpu.memory_space<vmem>>, vector<4x239xbf16>
    tpu.vector_store %arg8[%c32, %c0_21], %65 {strides = array<i32>} : memref<36x256xbf16, #tpu.memory_space<vmem>>, vector<4x239xbf16>,
    %c0_22 = arith.constant 0 : index
    %c0_23 = arith.constant 0 : index
    %67 = vector.load %arg4[%c0_22, %c0_23] : memref<8x36xbf16, #tpu.memory_space<vmem>>, vector<8x36xbf16>
    %c0_24 = arith.constant 0 : index
    %c0_25 = arith.constant 0 : index
    %68 = vector.load %arg8[%c0_24, %c0_25] : memref<36x256xbf16, #tpu.memory_space<vmem>>, vector<36x256xbf16>
    %cst_26 = arith.constant dense<0.000000e+00> : vector<8x256xf32>
    %69 = tpu.matmul %67, %68, %cst_26 {dimension_numbers = #tpu.dot_dimension_numbers<[1], [0], [0], [1], [0, 0, 1, 1], [], []>} : vector<8x36xbf16>, vector<36x256xbf16>, vector<8x256xf32> -> vector<8x256xf32>
    %c0_27 = arith.constant 0 : index
    %c0_28 = arith.constant 0 : index
    %c0_29 = arith.constant 0 : index
    %70 = vector.load %arg5[%c0_27, %c0_28, %c0_29] : memref<1x8x256xf32, #tpu.memory_space<vmem>>, vector<1x8x256xf32>
    %71 = vector.shape_cast %70 : vector<1x8x256xf32> to vector<8x256xf32>
    %72 = vector.shape_cast %69 : vector<8x256xf32> to vector<1x8x256xf32>
    tpu.vector_store %arg5[%c0_27, %c0_28, %c0_29], %72 {strides = array<i32>} : memref<1x8x256xf32, #tpu.memory_space<vmem>>, vector<1x8x256xf32>,
    %cst_30 = arith.constant dense<0.000000e+00> : vector<8xf32>
    %73 = vector.multi_reduction <add>, %69, %cst_30 [1] : vector<8x256xf32> to vector<8xf32>
    %74 = vector.shape_cast %73 : vector<8xf32> to vector<8x1xf32>
    %c0_31 = arith.constant 0 : index
    %c0_32 = arith.constant 0 : index
    %c0_33 = arith.constant 0 : index
    %75 = vector.load %arg6[%c0_31, %c0_32, %c0_33] : memref<1x8x1xf32, #tpu.memory_space<vmem>>, vector<1x8x1xf32>
    %76 = vector.shape_cast %75 : vector<1x8x1xf32> to vector<8x1xf32>
    %77 = vector.shape_cast %74 : vector<8x1xf32> to vector<1x8x1xf32>
    tpu.vector_store %arg6[%c0_31, %c0_32, %c0_33], %77 {strides = array<i32>} : memref<1x8x1xf32, #tpu.memory_space<vmem>>, vector<1x8x1xf32>,
    %78 = arith.mulf %69, %69 : vector<8x256xf32>
    %cst_34 = arith.constant dense<0.000000e+00> : vector<8xf32>
    %79 = vector.multi_reduction <add>, %78, %cst_34 [1] : vector<8x256xf32> to vector<8xf32>
    %80 = vector.shape_cast %79 : vector<8xf32> to vector<8x1xf32>
    %c0_35 = arith.constant 0 : index
    %c0_36 = arith.constant 0 : index
    %c0_37 = arith.constant 0 : index
    %81 = vector.load %arg7[%c0_35, %c0_36, %c0_37] : memref<1x8x1xf32, #tpu.memory_space<vmem>>, vector<1x8x1xf32>
    %82 = vector.shape_cast %81 : vector<1x8x1xf32> to vector<8x1xf32>
    %83 = vector.shape_cast %80 : vector<8x1xf32> to vector<1x8x1xf32>
    tpu.vector_store %arg7[%c0_35, %c0_36, %c0_37], %83 {strides = array<i32>} : memref<1x8x1xf32, #tpu.memory_space<vmem>>, vector<1x8x1xf32>,
    return
  }
  func.func @transform_0(%arg0: i32) -> (i32, i32, i32) {
    %c0_i32 = arith.constant 0 : i32
    %c0_i32_0 = arith.constant 0 : i32
    %c0_i32_1 = arith.constant 0 : i32
    return %arg0, %c0_i32, %c0_i32_0 : i32, i32, i32
  }
  func.func @transform_1(%arg0: i32) -> (i32, i32) {
    %c0_i32 = arith.constant 0 : i32
    %c0_i32_0 = arith.constant 0 : i32
    %c0_i32_1 = arith.constant 0 : i32
    return %c0_i32, %c0_i32_0 : i32, i32
  }
  func.func @transform_2(%arg0: i32) -> (i32, i32) {
    %c0_i32 = arith.constant 0 : i32
    %c0_i32_0 = arith.constant 0 : i32
    %c0_i32_1 = arith.constant 0 : i32
    return %c0_i32, %c0_i32_0 : i32, i32
  }
  func.func @transform_3(%arg0: i32) -> (i32, i32) {
    %c0_i32 = arith.constant 0 : i32
    %c0_i32_0 = arith.constant 0 : i32
    %c0_i32_1 = arith.constant 0 : i32
    return %c0_i32, %c0_i32_0 : i32, i32
  }
  func.func @transform_4(%arg0: i32) -> (i32, i32, i32) {
    %c0_i32 = arith.constant 0 : i32
    %c0_i32_0 = arith.constant 0 : i32
    %c0_i32_1 = arith.constant 0 : i32
    return %arg0, %c0_i32, %c0_i32_0 : i32, i32, i32
  }
  func.func @transform_5(%arg0: i32) -> (i32, i32, i32) {
    %c0_i32 = arith.constant 0 : i32
    %c0_i32_0 = arith.constant 0 : i32
    %c0_i32_1 = arith.constant 0 : i32
    return %arg0, %c0_i32, %c0_i32_0 : i32, i32, i32
  }
  func.func @transform_6(%arg0: i32) -> (i32, i32, i32) {
    %c0_i32 = arith.constant 0 : i32
    %c0_i32_0 = arith.constant 0 : i32
    %c0_i32_1 = arith.constant 0 : i32
    return %arg0, %c0_i32, %c0_i32_0 : i32, i32, i32
  }
}

module attributes {stable_mosaic.version = 11 : i64} {
  func.func @_conv3x3_kernel(%arg0: i32, %arg1: memref<1x24x256xf32, #tpu.memory_space<vmem>>, %arg2: memref<4x1xf32, #tpu.memory_space<vmem>>, %arg3: memref<4x1xf32, #tpu.memory_space<vmem>>, %arg4: memref<8x36xbf16, #tpu.memory_space<vmem>>, %arg5: memref<1x8x256xf32, #tpu.memory_space<vmem>>, %arg6: memref<1x8x1xf32, #tpu.memory_space<vmem>>, %arg7: memref<1x8x1xf32, #tpu.memory_space<vmem>>, %arg8: memref<36x256xbf16, #tpu.memory_space<vmem>>) attributes {dimension_semantics = [#tpu.dimension_semantics<parallel>], iteration_bounds = array<i64: 2>, scalar_prefetch = 0 : i64, scratch_operands = 1 : i64, tpu.core_type = #tpu.core_type<tc>, window_params = [{transform_indices = @transform_0, window_bounds = array<i64: 1, 24, 256>}, {pipeline_mode = #tpu.pipeline_mode<synchronous>, transform_indices = @transform_1, window_bounds = array<i64: 4, 1>}, {pipeline_mode = #tpu.pipeline_mode<synchronous>, transform_indices = @transform_2, window_bounds = array<i64: 4, 1>}, {pipeline_mode = #tpu.pipeline_mode<synchronous>, transform_indices = @transform_3, window_bounds = array<i64: 8, 36>}, {transform_indices = @transform_4, window_bounds = array<i64: 1, 8, 256>}, {transform_indices = @transform_5, window_bounds = array<i64: 1, 8, 1>}, {transform_indices = @transform_6, window_bounds = array<i64: 1, 8, 1>}]} {
    %c0 = arith.constant 0 : index
    %c8 = arith.constant 8 : index
    %c0_0 = arith.constant 0 : index
    %0 = vector.load %arg1[%c0, %c8, %c0_0] : memref<1x24x256xf32, #tpu.memory_space<vmem>>, vector<1x4x256xf32>
    %1 = vector.shape_cast %0 : vector<1x4x256xf32> to vector<4x256xf32>
    %c0_1 = arith.constant 0 : index
    %c0_2 = arith.constant 0 : index
    %2 = vector.load %arg2[%c0_1, %c0_2] : memref<4x1xf32, #tpu.memory_space<vmem>>, vector<4x1xf32>
    %3 = vector.broadcast %2 : vector<4x1xf32> to vector<4x256xf32>
    %4 = arith.mulf %1, %3 : vector<4x256xf32>
    %c0_3 = arith.constant 0 : index
    %c0_4 = arith.constant 0 : index
    %5 = vector.load %arg3[%c0_3, %c0_4] : memref<4x1xf32, #tpu.memory_space<vmem>>, vector<4x1xf32>
    %6 = vector.broadcast %5 : vector<4x1xf32> to vector<4x256xf32>
    %7 = arith.addf %4, %6 : vector<4x256xf32>
    %cst = arith.constant 0.000000e+00 : f32
    %8 = vector.broadcast %cst : f32 to vector<4x256xf32>
    %9 = arith.maximumf %7, %8 : vector<4x256xf32>
    %10 = tpu.iota {dimensions = array<i32: 1>} : vector<1x256xi32>
    %c16_i32 = arith.constant 16 : i32
    %c0_i32 = arith.constant 0 : i32
    %11 = arith.cmpi eq, %c16_i32, %c0_i32 : i32
    %c1_i32 = arith.constant 1 : i32
    %12 = arith.select %11, %c1_i32, %c16_i32 : i32
    %13 = vector.broadcast %12 : i32 to vector<1x256xi32>
    %14 = arith.remsi %10, %13 : vector<1x256xi32>
    %c0_i32_5 = arith.constant 0 : i32
    %15 = vector.broadcast %c0_i32_5 : i32 to vector<1x256xi32>
    %16 = arith.cmpi ne, %14, %15 : vector<1x256xi32>
    %c0_i32_6 = arith.constant 0 : i32
    %17 = vector.broadcast %c0_i32_6 : i32 to vector<1x256xi32>
    %18 = arith.cmpi slt, %14, %17 : vector<1x256xi32>
    %c0_i32_7 = arith.constant 0 : i32
    %19 = arith.cmpi slt, %12, %c0_i32_7 : i32
    %20 = vector.broadcast %19 : i1 to vector<1x256xi1>
    %21 = vector.broadcast %20 : vector<1x256xi1> to vector<1x256xi1>
    %22 = arith.xori %18, %21 : vector<1x256xi1>
    %23 = arith.andi %22, %16 : vector<1x256xi1>
    %24 = vector.broadcast %12 : i32 to vector<1x256xi32>
    %25 = arith.addi %14, %24 : vector<1x256xi32>
    %26 = arith.select %23, %25, %14 : vector<1x256xi1>, vector<1x256xi32>
    %c14_i32 = arith.constant 14 : i32
    %27 = vector.broadcast %c14_i32 : i32 to vector<1x256xi32>
    %28 = arith.cmpi sle, %26, %27 : vector<1x256xi32>
    %cst_8 = arith.constant 0.000000e+00 : f32
    %29 = vector.shape_cast %28 : vector<1x256xi1> to vector<1x256xi1>
    %30 = vector.broadcast %29 : vector<1x256xi1> to vector<4x256xi1>
    %31 = vector.broadcast %cst_8 : f32 to vector<4x256xf32>
    %32 = arith.select %30, %9, %31 : vector<4x256xi1>, vector<4x256xf32>
    %c1_i32_9 = arith.constant 1 : i32
    %33 = vector.broadcast %c1_i32_9 : i32 to vector<1x256xi32>
    %34 = arith.cmpi sge, %26, %33 : vector<1x256xi32>
    %cst_10 = arith.constant 0.000000e+00 : f32
    %35 = vector.shape_cast %34 : vector<1x256xi1> to vector<1x256xi1>
    %36 = vector.broadcast %35 : vector<1x256xi1> to vector<4x256xi1>
    %37 = vector.broadcast %cst_10 : f32 to vector<4x256xf32>
    %38 = arith.select %36, %9, %37 : vector<4x256xi1>, vector<4x256xf32>
    %cst_11 = arith.constant 0.000000e+00 : bf16
    %39 = vector.broadcast %cst_11 : bf16 to vector<36x256xbf16>
    %c0_12 = arith.constant 0 : index
    %c0_13 = arith.constant 0 : index
    %40 = vector.load %arg8[%c0_12, %c0_13] : memref<36x256xbf16, #tpu.memory_space<vmem>>, vector<36x256xbf16>
    tpu.vector_store %arg8[%c0_12, %c0_13], %39 {strides = array<i32>} : memref<36x256xbf16, #tpu.memory_space<vmem>>, vector<36x256xbf16>,
    %41 = vector.extract_strided_slice %32 {offsets = [0, 0], sizes = [4, 239], strides = [1, 1]} : vector<4x256xf32> to vector<4x239xf32>
    %42 = arith.truncf %41 : vector<4x239xf32> to vector<4x239xbf16>
    %c0_14 = arith.constant 0 : index
    %c17 = arith.constant 17 : index
    %43 = vector.load %arg8[%c0_14, %c17] : memref<36x256xbf16, #tpu.memory_space<vmem>>, vector<4x239xbf16>
    tpu.vector_store %arg8[%c0_14, %c17], %42 {strides = array<i32>} : memref<36x256xbf16, #tpu.memory_space<vmem>>, vector<4x239xbf16>,
    %44 = vector.extract_strided_slice %9 {offsets = [0, 0], sizes = [4, 240], strides = [1, 1]} : vector<4x256xf32> to vector<4x240xf32>
    %45 = arith.truncf %44 : vector<4x240xf32> to vector<4x240xbf16>
    %c4 = arith.constant 4 : index
    %c16 = arith.constant 16 : index
    %46 = vector.load %arg8[%c4, %c16] : memref<36x256xbf16, #tpu.memory_space<vmem>>, vector<4x240xbf16>
    tpu.vector_store %arg8[%c4, %c16], %45 {strides = array<i32>} : memref<36x256xbf16, #tpu.memory_space<vmem>>, vector<4x240xbf16>,
    %47 = vector.extract_strided_slice %38 {offsets = [0, 0], sizes = [4, 241], strides = [1, 1]} : vector<4x256xf32> to vector<4x241xf32>
    %48 = arith.truncf %47 : vector<4x241xf32> to vector<4x241xbf16>
    %c8_15 = arith.constant 8 : index
    %c15 = arith.constant 15 : index
    %49 = vector.load %arg8[%c8_15, %c15] : memref<36x256xbf16, #tpu.memory_space<vmem>>, vector<4x241xbf16>
    tpu.vector_store %arg8[%c8_15, %c15], %48 {strides = array<i32>} : memref<36x256xbf16, #tpu.memory_space<vmem>>, vector<4x241xbf16>,
    %50 = vector.extract_strided_slice %32 {offsets = [0, 0], sizes = [4, 255], strides = [1, 1]} : vector<4x256xf32> to vector<4x255xf32>
    %51 = arith.truncf %50 : vector<4x255xf32> to vector<4x255xbf16>
    %c12 = arith.constant 12 : index
    %c1 = arith.constant 1 : index
    %52 = vector.load %arg8[%c12, %c1] : memref<36x256xbf16, #tpu.memory_space<vmem>>, vector<4x255xbf16>
    tpu.vector_store %arg8[%c12, %c1], %51 {strides = array<i32>} : memref<36x256xbf16, #tpu.memory_space<vmem>>, vector<4x255xbf16>,
    %53 = arith.truncf %9 : vector<4x256xf32> to vector<4x256xbf16>
    %c16_16 = arith.constant 16 : index
    %c0_17 = arith.constant 0 : index
    %54 = vector.load %arg8[%c16_16, %c0_17] : memref<36x256xbf16, #tpu.memory_space<vmem>>, vector<4x256xbf16>
    tpu.vector_store %arg8[%c16_16, %c0_17], %53 {strides = array<i32>} : memref<36x256xbf16, #tpu.memory_space<vmem>>, vector<4x256xbf16>,
    %55 = vector.extract_strided_slice %38 {offsets = [0, 1], sizes = [4, 255], strides = [1, 1]} : vector<4x256xf32> to vector<4x255xf32>
    %56 = arith.truncf %55 : vector<4x255xf32> to vector<4x255xbf16>
    %c20 = arith.constant 20 : index
    %c0_18 = arith.constant 0 : index
    %57 = vector.load %arg8[%c20, %c0_18] : memref<36x256xbf16, #tpu.memory_space<vmem>>, vector<4x255xbf16>
    tpu.vector_store %arg8[%c20, %c0_18], %56 {strides = array<i32>} : memref<36x256xbf16, #tpu.memory_space<vmem>>, vector<4x255xbf16>,
    %58 = vector.extract_strided_slice %32 {offsets = [0, 15], sizes = [4, 241], strides = [1, 1]} : vector<4x256xf32> to vector<4x241xf32>
    %59 = arith.truncf %58 : vector<4x241xf32> to vector<4x241xbf16>
    %c24 = arith.constant 24 : index
    %c0_19 = arith.constant 0 : index
    %60 = vector.load %arg8[%c24, %c0_19] : memref<36x256xbf16, #tpu.memory_space<vmem>>, vector<4x241xbf16>
    tpu.vector_store %arg8[%c24, %c0_19], %59 {strides = array<i32>} : memref<36x256xbf16, #tpu.memory_space<vmem>>, vector<4x241xbf16>,
    %61 = vector.extract_strided_slice %9 {offsets = [0, 16], sizes = [4, 240], strides = [1, 1]} : vector<4x256xf32> to vector<4x240xf32>
    %62 = arith.truncf %61 : vector<4x240xf32> to vector<4x240xbf16>
    %c28 = arith.constant 28 : index
    %c0_20 = arith.constant 0 : index
    %63 = vector.load %arg8[%c28, %c0_20] : memref<36x256xbf16, #tpu.memory_space<vmem>>, vector<4x240xbf16>
    tpu.vector_store %arg8[%c28, %c0_20], %62 {strides = array<i32>} : memref<36x256xbf16, #tpu.memory_space<vmem>>, vector<4x240xbf16>,
    %64 = vector.extract_strided_slice %38 {offsets = [0, 17], sizes = [4, 239], strides = [1, 1]} : vector<4x256xf32> to vector<4x239xf32>
    %65 = arith.truncf %64 : vector<4x239xf32> to vector<4x239xbf16>
    %c32 = arith.constant 32 : index
    %c0_21 = arith.constant 0 : index
    %66 = vector.load %arg8[%c32, %c0_21] : memref<36x256xbf16, #tpu.memory_space<vmem>>, vector<4x239xbf16>
    tpu.vector_store %arg8[%c32, %c0_21], %65 {strides = array<i32>} : memref<36x256xbf16, #tpu.memory_space<vmem>>, vector<4x239xbf16>,
    %c0_22 = arith.constant 0 : index
    %c0_23 = arith.constant 0 : index
    %67 = vector.load %arg4[%c0_22, %c0_23] : memref<8x36xbf16, #tpu.memory_space<vmem>>, vector<8x36xbf16>
    %c0_24 = arith.constant 0 : index
    %c0_25 = arith.constant 0 : index
    %68 = vector.load %arg8[%c0_24, %c0_25] : memref<36x256xbf16, #tpu.memory_space<vmem>>, vector<36x256xbf16>
    %cst_26 = arith.constant dense<0.000000e+00> : vector<8x256xf32>
    %69 = tpu.matmul %67, %68, %cst_26 {dimension_numbers = #tpu.dot_dimension_numbers<[1], [0], [0], [1], [0, 0, 1, 1], [], []>} : vector<8x36xbf16>, vector<36x256xbf16>, vector<8x256xf32> -> vector<8x256xf32>
    %c0_27 = arith.constant 0 : index
    %c0_28 = arith.constant 0 : index
    %c0_29 = arith.constant 0 : index
    %70 = vector.load %arg5[%c0_27, %c0_28, %c0_29] : memref<1x8x256xf32, #tpu.memory_space<vmem>>, vector<1x8x256xf32>
    %71 = vector.shape_cast %70 : vector<1x8x256xf32> to vector<8x256xf32>
    %72 = vector.shape_cast %69 : vector<8x256xf32> to vector<1x8x256xf32>
    tpu.vector_store %arg5[%c0_27, %c0_28, %c0_29], %72 {strides = array<i32>} : memref<1x8x256xf32, #tpu.memory_space<vmem>>, vector<1x8x256xf32>,
    %cst_30 = arith.constant dense<0.000000e+00> : vector<8xf32>
    %73 = vector.multi_reduction <add>, %69, %cst_30 [1] : vector<8x256xf32> to vector<8xf32>
    %74 = vector.shape_cast %73 : vector<8xf32> to vector<8x1xf32>
    %c0_31 = arith.constant 0 : index
    %c0_32 = arith.constant 0 : index
    %c0_33 = arith.constant 0 : index
    %75 = vector.load %arg6[%c0_31, %c0_32, %c0_33] : memref<1x8x1xf32, #tpu.memory_space<vmem>>, vector<1x8x1xf32>
    %76 = vector.shape_cast %75 : vector<1x8x1xf32> to vector<8x1xf32>
    %77 = vector.shape_cast %74 : vector<8x1xf32> to vector<1x8x1xf32>
    tpu.vector_store %arg6[%c0_31, %c0_32, %c0_33], %77 {strides = array<i32>} : memref<1x8x1xf32, #tpu.memory_space<vmem>>, vector<1x8x1xf32>,
    %78 = arith.mulf %69, %69 : vector<8x256xf32>
    %cst_34 = arith.constant dense<0.000000e+00> : vector<8xf32>
    %79 = vector.multi_reduction <add>, %78, %cst_34 [1] : vector<8x256xf32> to vector<8xf32>
    %80 = vector.shape_cast %79 : vector<8xf32> to vector<8x1xf32>
    %c0_35 = arith.constant 0 : index
    %c0_36 = arith.constant 0 : index
    %c0_37 = arith.constant 0 : index
    %81 = vector.load %arg7[%c0_35, %c0_36, %c0_37] : memref<1x8x1xf32, #tpu.memory_space<vmem>>, vector<1x8x1xf32>
    %82 = vector.shape_cast %81 : vector<1x8x1xf32> to vector<8x1xf32>
    %83 = vector.shape_cast %80 : vector<8x1xf32> to vector<1x8x1xf32>
    tpu.vector_store %arg7[%c0_35, %c0_36, %c0_37], %83 {strides = array<i32>} : memref<1x8x1xf32, #tpu.memory_space<vmem>>, vector<1x8x1xf32>,
    return
  }
  func.func @transform_0(%arg0: i32) -> (i32, i32, i32) {
    %c0_i32 = arith.constant 0 : i32
    %c0_i32_0 = arith.constant 0 : i32
    %c0_i32_1 = arith.constant 0 : i32
    return %arg0, %c0_i32, %c0_i32_0 : i32, i32, i32
  }
  func.func @transform_1(%arg0: i32) -> (i32, i32) {
    %c0_i32 = arith.constant 0 : i32
    %c0_i32_0 = arith.constant 0 : i32
    %c0_i32_1 = arith.constant 0 : i32
    return %c0_i32, %c0_i32_0 : i32, i32
  }
  func.func @transform_2(%arg0: i32) -> (i32, i32) {
    %c0_i32 = arith.constant 0 : i32
    %c0_i32_0 = arith.constant 0 : i32
    %c0_i32_1 = arith.constant 0 : i32
    return %c0_i32, %c0_i32_0 : i32, i32
  }
  func.func @transform_3(%arg0: i32) -> (i32, i32) {
    %c0_i32 = arith.constant 0 : i32
    %c0_i32_0 = arith.constant 0 : i32
    %c0_i32_1 = arith.constant 0 : i32
    return %c0_i32, %c0_i32_0 : i32, i32
  }
  func.func @transform_4(%arg0: i32) -> (i32, i32, i32) {
    %c0_i32 = arith.constant 0 : i32
    %c0_i32_0 = arith.constant 0 : i32
    %c0_i32_1 = arith.constant 0 : i32
    return %arg0, %c0_i32, %c0_i32_0 : i32, i32, i32
  }
  func.func @transform_5(%arg0: i32) -> (i32, i32, i32) {
    %c0_i32 = arith.constant 0 : i32
    %c0_i32_0 = arith.constant 0 : i32
    %c0_i32_1 = arith.constant 0 : i32
    return %arg0, %c0_i32, %c0_i32_0 : i32, i32, i32
  }
  func.func @transform_6(%arg0: i32) -> (i32, i32, i32) {
    %c0_i32 = arith.constant 0 : i32
    %c0_i32_0 = arith.constant 0 : i32
    %c0_i32_1 = arith.constant 0 : i32
    return %arg0, %c0_i32, %c0_i32_0 : i32, i32, i32
  }
}

module attributes {stable_mosaic.version = 11 : i64} {
  func.func @_conv3x3_kernel(%arg0: i32, %arg1: memref<1x8x256xf32, #tpu.memory_space<vmem>>, %arg2: memref<8x1xf32, #tpu.memory_space<vmem>>, %arg3: memref<8x1xf32, #tpu.memory_space<vmem>>, %arg4: memref<8x72xbf16, #tpu.memory_space<vmem>>, %arg5: memref<1x8x256xf32, #tpu.memory_space<vmem>>, %arg6: memref<1x8x1xf32, #tpu.memory_space<vmem>>, %arg7: memref<1x8x1xf32, #tpu.memory_space<vmem>>, %arg8: memref<72x256xbf16, #tpu.memory_space<vmem>>) attributes {dimension_semantics = [#tpu.dimension_semantics<parallel>], iteration_bounds = array<i64: 2>, scalar_prefetch = 0 : i64, scratch_operands = 1 : i64, tpu.core_type = #tpu.core_type<tc>, window_params = [{transform_indices = @transform_0, window_bounds = array<i64: 1, 8, 256>}, {pipeline_mode = #tpu.pipeline_mode<synchronous>, transform_indices = @transform_1, window_bounds = array<i64: 8, 1>}, {pipeline_mode = #tpu.pipeline_mode<synchronous>, transform_indices = @transform_2, window_bounds = array<i64: 8, 1>}, {pipeline_mode = #tpu.pipeline_mode<synchronous>, transform_indices = @transform_3, window_bounds = array<i64: 8, 72>}, {transform_indices = @transform_4, window_bounds = array<i64: 1, 8, 256>}, {transform_indices = @transform_5, window_bounds = array<i64: 1, 8, 1>}, {transform_indices = @transform_6, window_bounds = array<i64: 1, 8, 1>}]} {
    %c0 = arith.constant 0 : index
    %c0_0 = arith.constant 0 : index
    %c0_1 = arith.constant 0 : index
    %0 = vector.load %arg1[%c0, %c0_0, %c0_1] : memref<1x8x256xf32, #tpu.memory_space<vmem>>, vector<1x8x256xf32>
    %1 = vector.shape_cast %0 : vector<1x8x256xf32> to vector<8x256xf32>
    %c0_2 = arith.constant 0 : index
    %c0_3 = arith.constant 0 : index
    %2 = vector.load %arg2[%c0_2, %c0_3] : memref<8x1xf32, #tpu.memory_space<vmem>>, vector<8x1xf32>
    %3 = vector.broadcast %2 : vector<8x1xf32> to vector<8x256xf32>
    %4 = arith.mulf %1, %3 : vector<8x256xf32>
    %c0_4 = arith.constant 0 : index
    %c0_5 = arith.constant 0 : index
    %5 = vector.load %arg3[%c0_4, %c0_5] : memref<8x1xf32, #tpu.memory_space<vmem>>, vector<8x1xf32>
    %6 = vector.broadcast %5 : vector<8x1xf32> to vector<8x256xf32>
    %7 = arith.addf %4, %6 : vector<8x256xf32>
    %cst = arith.constant 0.000000e+00 : f32
    %8 = vector.broadcast %cst : f32 to vector<8x256xf32>
    %9 = arith.maximumf %7, %8 : vector<8x256xf32>
    %10 = tpu.iota {dimensions = array<i32: 1>} : vector<1x256xi32>
    %c16_i32 = arith.constant 16 : i32
    %c0_i32 = arith.constant 0 : i32
    %11 = arith.cmpi eq, %c16_i32, %c0_i32 : i32
    %c1_i32 = arith.constant 1 : i32
    %12 = arith.select %11, %c1_i32, %c16_i32 : i32
    %13 = vector.broadcast %12 : i32 to vector<1x256xi32>
    %14 = arith.remsi %10, %13 : vector<1x256xi32>
    %c0_i32_6 = arith.constant 0 : i32
    %15 = vector.broadcast %c0_i32_6 : i32 to vector<1x256xi32>
    %16 = arith.cmpi ne, %14, %15 : vector<1x256xi32>
    %c0_i32_7 = arith.constant 0 : i32
    %17 = vector.broadcast %c0_i32_7 : i32 to vector<1x256xi32>
    %18 = arith.cmpi slt, %14, %17 : vector<1x256xi32>
    %c0_i32_8 = arith.constant 0 : i32
    %19 = arith.cmpi slt, %12, %c0_i32_8 : i32
    %20 = vector.broadcast %19 : i1 to vector<1x256xi1>
    %21 = vector.broadcast %20 : vector<1x256xi1> to vector<1x256xi1>
    %22 = arith.xori %18, %21 : vector<1x256xi1>
    %23 = arith.andi %22, %16 : vector<1x256xi1>
    %24 = vector.broadcast %12 : i32 to vector<1x256xi32>
    %25 = arith.addi %14, %24 : vector<1x256xi32>
    %26 = arith.select %23, %25, %14 : vector<1x256xi1>, vector<1x256xi32>
    %c14_i32 = arith.constant 14 : i32
    %27 = vector.broadcast %c14_i32 : i32 to vector<1x256xi32>
    %28 = arith.cmpi sle, %26, %27 : vector<1x256xi32>
    %cst_9 = arith.constant 0.000000e+00 : f32
    %29 = vector.shape_cast %28 : vector<1x256xi1> to vector<1x256xi1>
    %30 = vector.broadcast %29 : vector<1x256xi1> to vector<8x256xi1>
    %31 = vector.broadcast %cst_9 : f32 to vector<8x256xf32>
    %32 = arith.select %30, %9, %31 : vector<8x256xi1>, vector<8x256xf32>
    %c1_i32_10 = arith.constant 1 : i32
    %33 = vector.broadcast %c1_i32_10 : i32 to vector<1x256xi32>
    %34 = arith.cmpi sge, %26, %33 : vector<1x256xi32>
    %cst_11 = arith.constant 0.000000e+00 : f32
    %35 = vector.shape_cast %34 : vector<1x256xi1> to vector<1x256xi1>
    %36 = vector.broadcast %35 : vector<1x256xi1> to vector<8x256xi1>
    %37 = vector.broadcast %cst_11 : f32 to vector<8x256xf32>
    %38 = arith.select %36, %9, %37 : vector<8x256xi1>, vector<8x256xf32>
    %cst_12 = arith.constant 0.000000e+00 : bf16
    %39 = vector.broadcast %cst_12 : bf16 to vector<72x256xbf16>
    %c0_13 = arith.constant 0 : index
    %c0_14 = arith.constant 0 : index
    %40 = vector.load %arg8[%c0_13, %c0_14] : memref<72x256xbf16, #tpu.memory_space<vmem>>, vector<72x256xbf16>
    tpu.vector_store %arg8[%c0_13, %c0_14], %39 {strides = array<i32>} : memref<72x256xbf16, #tpu.memory_space<vmem>>, vector<72x256xbf16>,
    %41 = vector.extract_strided_slice %32 {offsets = [0, 0], sizes = [8, 239], strides = [1, 1]} : vector<8x256xf32> to vector<8x239xf32>
    %42 = arith.truncf %41 : vector<8x239xf32> to vector<8x239xbf16>
    %c0_15 = arith.constant 0 : index
    %c17 = arith.constant 17 : index
    %43 = vector.load %arg8[%c0_15, %c17] : memref<72x256xbf16, #tpu.memory_space<vmem>>, vector<8x239xbf16>
    tpu.vector_store %arg8[%c0_15, %c17], %42 {strides = array<i32>} : memref<72x256xbf16, #tpu.memory_space<vmem>>, vector<8x239xbf16>,
    %44 = vector.extract_strided_slice %9 {offsets = [0, 0], sizes = [8, 240], strides = [1, 1]} : vector<8x256xf32> to vector<8x240xf32>
    %45 = arith.truncf %44 : vector<8x240xf32> to vector<8x240xbf16>
    %c8 = arith.constant 8 : index
    %c16 = arith.constant 16 : index
    %46 = vector.load %arg8[%c8, %c16] : memref<72x256xbf16, #tpu.memory_space<vmem>>, vector<8x240xbf16>
    tpu.vector_store %arg8[%c8, %c16], %45 {strides = array<i32>} : memref<72x256xbf16, #tpu.memory_space<vmem>>, vector<8x240xbf16>,
    %47 = vector.extract_strided_slice %38 {offsets = [0, 0], sizes = [8, 241], strides = [1, 1]} : vector<8x256xf32> to vector<8x241xf32>
    %48 = arith.truncf %47 : vector<8x241xf32> to vector<8x241xbf16>
    %c16_16 = arith.constant 16 : index
    %c15 = arith.constant 15 : index
    %49 = vector.load %arg8[%c16_16, %c15] : memref<72x256xbf16, #tpu.memory_space<vmem>>, vector<8x241xbf16>
    tpu.vector_store %arg8[%c16_16, %c15], %48 {strides = array<i32>} : memref<72x256xbf16, #tpu.memory_space<vmem>>, vector<8x241xbf16>,
    %50 = vector.extract_strided_slice %32 {offsets = [0, 0], sizes = [8, 255], strides = [1, 1]} : vector<8x256xf32> to vector<8x255xf32>
    %51 = arith.truncf %50 : vector<8x255xf32> to vector<8x255xbf16>
    %c24 = arith.constant 24 : index
    %c1 = arith.constant 1 : index
    %52 = vector.load %arg8[%c24, %c1] : memref<72x256xbf16, #tpu.memory_space<vmem>>, vector<8x255xbf16>
    tpu.vector_store %arg8[%c24, %c1], %51 {strides = array<i32>} : memref<72x256xbf16, #tpu.memory_space<vmem>>, vector<8x255xbf16>,
    %53 = arith.truncf %9 : vector<8x256xf32> to vector<8x256xbf16>
    %c32 = arith.constant 32 : index
    %c0_17 = arith.constant 0 : index
    %54 = vector.load %arg8[%c32, %c0_17] : memref<72x256xbf16, #tpu.memory_space<vmem>>, vector<8x256xbf16>
    tpu.vector_store %arg8[%c32, %c0_17], %53 {strides = array<i32>} : memref<72x256xbf16, #tpu.memory_space<vmem>>, vector<8x256xbf16>,
    %55 = vector.extract_strided_slice %38 {offsets = [0, 1], sizes = [8, 255], strides = [1, 1]} : vector<8x256xf32> to vector<8x255xf32>
    %56 = arith.truncf %55 : vector<8x255xf32> to vector<8x255xbf16>
    %c40 = arith.constant 40 : index
    %c0_18 = arith.constant 0 : index
    %57 = vector.load %arg8[%c40, %c0_18] : memref<72x256xbf16, #tpu.memory_space<vmem>>, vector<8x255xbf16>
    tpu.vector_store %arg8[%c40, %c0_18], %56 {strides = array<i32>} : memref<72x256xbf16, #tpu.memory_space<vmem>>, vector<8x255xbf16>,
    %58 = vector.extract_strided_slice %32 {offsets = [0, 15], sizes = [8, 241], strides = [1, 1]} : vector<8x256xf32> to vector<8x241xf32>
    %59 = arith.truncf %58 : vector<8x241xf32> to vector<8x241xbf16>
    %c48 = arith.constant 48 : index
    %c0_19 = arith.constant 0 : index
    %60 = vector.load %arg8[%c48, %c0_19] : memref<72x256xbf16, #tpu.memory_space<vmem>>, vector<8x241xbf16>
    tpu.vector_store %arg8[%c48, %c0_19], %59 {strides = array<i32>} : memref<72x256xbf16, #tpu.memory_space<vmem>>, vector<8x241xbf16>,
    %61 = vector.extract_strided_slice %9 {offsets = [0, 16], sizes = [8, 240], strides = [1, 1]} : vector<8x256xf32> to vector<8x240xf32>
    %62 = arith.truncf %61 : vector<8x240xf32> to vector<8x240xbf16>
    %c56 = arith.constant 56 : index
    %c0_20 = arith.constant 0 : index
    %63 = vector.load %arg8[%c56, %c0_20] : memref<72x256xbf16, #tpu.memory_space<vmem>>, vector<8x240xbf16>
    tpu.vector_store %arg8[%c56, %c0_20], %62 {strides = array<i32>} : memref<72x256xbf16, #tpu.memory_space<vmem>>, vector<8x240xbf16>,
    %64 = vector.extract_strided_slice %38 {offsets = [0, 17], sizes = [8, 239], strides = [1, 1]} : vector<8x256xf32> to vector<8x239xf32>
    %65 = arith.truncf %64 : vector<8x239xf32> to vector<8x239xbf16>
    %c64 = arith.constant 64 : index
    %c0_21 = arith.constant 0 : index
    %66 = vector.load %arg8[%c64, %c0_21] : memref<72x256xbf16, #tpu.memory_space<vmem>>, vector<8x239xbf16>
    tpu.vector_store %arg8[%c64, %c0_21], %65 {strides = array<i32>} : memref<72x256xbf16, #tpu.memory_space<vmem>>, vector<8x239xbf16>,
    %c0_22 = arith.constant 0 : index
    %c0_23 = arith.constant 0 : index
    %67 = vector.load %arg4[%c0_22, %c0_23] : memref<8x72xbf16, #tpu.memory_space<vmem>>, vector<8x72xbf16>
    %c0_24 = arith.constant 0 : index
    %c0_25 = arith.constant 0 : index
    %68 = vector.load %arg8[%c0_24, %c0_25] : memref<72x256xbf16, #tpu.memory_space<vmem>>, vector<72x256xbf16>
    %cst_26 = arith.constant dense<0.000000e+00> : vector<8x256xf32>
    %69 = tpu.matmul %67, %68, %cst_26 {dimension_numbers = #tpu.dot_dimension_numbers<[1], [0], [0], [1], [0, 0, 1, 1], [], []>} : vector<8x72xbf16>, vector<72x256xbf16>, vector<8x256xf32> -> vector<8x256xf32>
    %c0_27 = arith.constant 0 : index
    %c0_28 = arith.constant 0 : index
    %c0_29 = arith.constant 0 : index
    %70 = vector.load %arg5[%c0_27, %c0_28, %c0_29] : memref<1x8x256xf32, #tpu.memory_space<vmem>>, vector<1x8x256xf32>
    %71 = vector.shape_cast %70 : vector<1x8x256xf32> to vector<8x256xf32>
    %72 = vector.shape_cast %69 : vector<8x256xf32> to vector<1x8x256xf32>
    tpu.vector_store %arg5[%c0_27, %c0_28, %c0_29], %72 {strides = array<i32>} : memref<1x8x256xf32, #tpu.memory_space<vmem>>, vector<1x8x256xf32>,
    %cst_30 = arith.constant dense<0.000000e+00> : vector<8xf32>
    %73 = vector.multi_reduction <add>, %69, %cst_30 [1] : vector<8x256xf32> to vector<8xf32>
    %74 = vector.shape_cast %73 : vector<8xf32> to vector<8x1xf32>
    %c0_31 = arith.constant 0 : index
    %c0_32 = arith.constant 0 : index
    %c0_33 = arith.constant 0 : index
    %75 = vector.load %arg6[%c0_31, %c0_32, %c0_33] : memref<1x8x1xf32, #tpu.memory_space<vmem>>, vector<1x8x1xf32>
    %76 = vector.shape_cast %75 : vector<1x8x1xf32> to vector<8x1xf32>
    %77 = vector.shape_cast %74 : vector<8x1xf32> to vector<1x8x1xf32>
    tpu.vector_store %arg6[%c0_31, %c0_32, %c0_33], %77 {strides = array<i32>} : memref<1x8x1xf32, #tpu.memory_space<vmem>>, vector<1x8x1xf32>,
    %78 = arith.mulf %69, %69 : vector<8x256xf32>
    %cst_34 = arith.constant dense<0.000000e+00> : vector<8xf32>
    %79 = vector.multi_reduction <add>, %78, %cst_34 [1] : vector<8x256xf32> to vector<8xf32>
    %80 = vector.shape_cast %79 : vector<8xf32> to vector<8x1xf32>
    %c0_35 = arith.constant 0 : index
    %c0_36 = arith.constant 0 : index
    %c0_37 = arith.constant 0 : index
    %81 = vector.load %arg7[%c0_35, %c0_36, %c0_37] : memref<1x8x1xf32, #tpu.memory_space<vmem>>, vector<1x8x1xf32>
    %82 = vector.shape_cast %81 : vector<1x8x1xf32> to vector<8x1xf32>
    %83 = vector.shape_cast %80 : vector<8x1xf32> to vector<1x8x1xf32>
    tpu.vector_store %arg7[%c0_35, %c0_36, %c0_37], %83 {strides = array<i32>} : memref<1x8x1xf32, #tpu.memory_space<vmem>>, vector<1x8x1xf32>,
    return
  }
  func.func @transform_0(%arg0: i32) -> (i32, i32, i32) {
    %c0_i32 = arith.constant 0 : i32
    %c0_i32_0 = arith.constant 0 : i32
    %c0_i32_1 = arith.constant 0 : i32
    return %arg0, %c0_i32, %c0_i32_0 : i32, i32, i32
  }
  func.func @transform_1(%arg0: i32) -> (i32, i32) {
    %c0_i32 = arith.constant 0 : i32
    %c0_i32_0 = arith.constant 0 : i32
    %c0_i32_1 = arith.constant 0 : i32
    return %c0_i32, %c0_i32_0 : i32, i32
  }
  func.func @transform_2(%arg0: i32) -> (i32, i32) {
    %c0_i32 = arith.constant 0 : i32
    %c0_i32_0 = arith.constant 0 : i32
    %c0_i32_1 = arith.constant 0 : i32
    return %c0_i32, %c0_i32_0 : i32, i32
  }
  func.func @transform_3(%arg0: i32) -> (i32, i32) {
    %c0_i32 = arith.constant 0 : i32
    %c0_i32_0 = arith.constant 0 : i32
    %c0_i32_1 = arith.constant 0 : i32
    return %c0_i32, %c0_i32_0 : i32, i32
  }
  func.func @transform_4(%arg0: i32) -> (i32, i32, i32) {
    %c0_i32 = arith.constant 0 : i32
    %c0_i32_0 = arith.constant 0 : i32
    %c0_i32_1 = arith.constant 0 : i32
    return %arg0, %c0_i32, %c0_i32_0 : i32, i32, i32
  }
  func.func @transform_5(%arg0: i32) -> (i32, i32, i32) {
    %c0_i32 = arith.constant 0 : i32
    %c0_i32_0 = arith.constant 0 : i32
    %c0_i32_1 = arith.constant 0 : i32
    return %arg0, %c0_i32, %c0_i32_0 : i32, i32, i32
  }
  func.func @transform_6(%arg0: i32) -> (i32, i32, i32) {
    %c0_i32 = arith.constant 0 : i32
    %c0_i32_0 = arith.constant 0 : i32
    %c0_i32_1 = arith.constant 0 : i32
    return %arg0, %c0_i32, %c0_i32_0 : i32, i32, i32
  }
}

module attributes {stable_mosaic.version = 11 : i64} {
  func.func @_finalize_kernel(%arg0: i32, %arg1: memref<1x24x256xf32, #tpu.memory_space<vmem>>, %arg2: memref<1x8x256xf32, #tpu.memory_space<vmem>>, %arg3: memref<1x8x256xf32, #tpu.memory_space<vmem>>, %arg4: memref<32x1xf32, #tpu.memory_space<vmem>>, %arg5: memref<32x1xf32, #tpu.memory_space<vmem>>, %arg6: memref<1x32x256xf32, #tpu.memory_space<vmem>>) attributes {dimension_semantics = [#tpu.dimension_semantics<parallel>], iteration_bounds = array<i64: 2>, scalar_prefetch = 0 : i64, scratch_operands = 0 : i64, tpu.core_type = #tpu.core_type<tc>, window_params = [{transform_indices = @transform_0, window_bounds = array<i64: 1, 24, 256>}, {transform_indices = @transform_1, window_bounds = array<i64: 1, 8, 256>}, {transform_indices = @transform_2, window_bounds = array<i64: 1, 8, 256>}, {pipeline_mode = #tpu.pipeline_mode<synchronous>, transform_indices = @transform_3, window_bounds = array<i64: 32, 1>}, {pipeline_mode = #tpu.pipeline_mode<synchronous>, transform_indices = @transform_4, window_bounds = array<i64: 32, 1>}, {transform_indices = @transform_5, window_bounds = array<i64: 1, 32, 256>}]} {
    %c0 = arith.constant 0 : index
    %c0_0 = arith.constant 0 : index
    %c0_1 = arith.constant 0 : index
    %0 = vector.load %arg1[%c0, %c0_0, %c0_1] : memref<1x24x256xf32, #tpu.memory_space<vmem>>, vector<1x8x256xf32>
    %1 = vector.shape_cast %0 : vector<1x8x256xf32> to vector<8x256xf32>
    %c0_2 = arith.constant 0 : index
    %c0_3 = arith.constant 0 : index
    %2 = vector.load %arg4[%c0_2, %c0_3] : memref<32x1xf32, #tpu.memory_space<vmem>>, vector<8x1xf32>
    %3 = vector.broadcast %2 : vector<8x1xf32> to vector<8x256xf32>
    %4 = arith.mulf %1, %3 : vector<8x256xf32>
    %c0_4 = arith.constant 0 : index
    %c0_5 = arith.constant 0 : index
    %5 = vector.load %arg5[%c0_4, %c0_5] : memref<32x1xf32, #tpu.memory_space<vmem>>, vector<8x1xf32>
    %6 = vector.broadcast %5 : vector<8x1xf32> to vector<8x256xf32>
    %7 = arith.addf %4, %6 : vector<8x256xf32>
    %cst = arith.constant 0.000000e+00 : f32
    %8 = vector.broadcast %cst : f32 to vector<8x256xf32>
    %9 = arith.maximumf %7, %8 : vector<8x256xf32>
    %c0_6 = arith.constant 0 : index
    %c0_7 = arith.constant 0 : index
    %c0_8 = arith.constant 0 : index
    %10 = vector.load %arg6[%c0_6, %c0_7, %c0_8] : memref<1x32x256xf32, #tpu.memory_space<vmem>>, vector<1x8x256xf32>
    %11 = vector.shape_cast %10 : vector<1x8x256xf32> to vector<8x256xf32>
    %12 = vector.shape_cast %9 : vector<8x256xf32> to vector<1x8x256xf32>
    tpu.vector_store %arg6[%c0_6, %c0_7, %c0_8], %12 {strides = array<i32>} : memref<1x32x256xf32, #tpu.memory_space<vmem>>, vector<1x8x256xf32>,
    %c0_9 = arith.constant 0 : index
    %c0_10 = arith.constant 0 : index
    %c0_11 = arith.constant 0 : index
    %13 = vector.load %arg2[%c0_9, %c0_10, %c0_11] : memref<1x8x256xf32, #tpu.memory_space<vmem>>, vector<1x8x256xf32>
    %14 = vector.shape_cast %13 : vector<1x8x256xf32> to vector<8x256xf32>
    %c8 = arith.constant 8 : index
    %c0_12 = arith.constant 0 : index
    %15 = vector.load %arg4[%c8, %c0_12] : memref<32x1xf32, #tpu.memory_space<vmem>>, vector<8x1xf32>
    %16 = vector.broadcast %15 : vector<8x1xf32> to vector<8x256xf32>
    %17 = arith.mulf %14, %16 : vector<8x256xf32>
    %c8_13 = arith.constant 8 : index
    %c0_14 = arith.constant 0 : index
    %18 = vector.load %arg5[%c8_13, %c0_14] : memref<32x1xf32, #tpu.memory_space<vmem>>, vector<8x1xf32>
    %19 = vector.broadcast %18 : vector<8x1xf32> to vector<8x256xf32>
    %20 = arith.addf %17, %19 : vector<8x256xf32>
    %cst_15 = arith.constant 0.000000e+00 : f32
    %21 = vector.broadcast %cst_15 : f32 to vector<8x256xf32>
    %22 = arith.maximumf %20, %21 : vector<8x256xf32>
    %c0_16 = arith.constant 0 : index
    %c8_17 = arith.constant 8 : index
    %c0_18 = arith.constant 0 : index
    %23 = vector.load %arg6[%c0_16, %c8_17, %c0_18] : memref<1x32x256xf32, #tpu.memory_space<vmem>>, vector<1x8x256xf32>
    %24 = vector.shape_cast %23 : vector<1x8x256xf32> to vector<8x256xf32>
    %25 = vector.shape_cast %22 : vector<8x256xf32> to vector<1x8x256xf32>
    tpu.vector_store %arg6[%c0_16, %c8_17, %c0_18], %25 {strides = array<i32>} : memref<1x32x256xf32, #tpu.memory_space<vmem>>, vector<1x8x256xf32>,
    %c0_19 = arith.constant 0 : index
    %c0_20 = arith.constant 0 : index
    %c0_21 = arith.constant 0 : index
    %26 = vector.load %arg3[%c0_19, %c0_20, %c0_21] : memref<1x8x256xf32, #tpu.memory_space<vmem>>, vector<1x8x256xf32>
    %27 = vector.shape_cast %26 : vector<1x8x256xf32> to vector<8x256xf32>
    %c16 = arith.constant 16 : index
    %c0_22 = arith.constant 0 : index
    %28 = vector.load %arg4[%c16, %c0_22] : memref<32x1xf32, #tpu.memory_space<vmem>>, vector<8x1xf32>
    %29 = vector.broadcast %28 : vector<8x1xf32> to vector<8x256xf32>
    %30 = arith.mulf %27, %29 : vector<8x256xf32>
    %c16_23 = arith.constant 16 : index
    %c0_24 = arith.constant 0 : index
    %31 = vector.load %arg5[%c16_23, %c0_24] : memref<32x1xf32, #tpu.memory_space<vmem>>, vector<8x1xf32>
    %32 = vector.broadcast %31 : vector<8x1xf32> to vector<8x256xf32>
    %33 = arith.addf %30, %32 : vector<8x256xf32>
    %cst_25 = arith.constant 0.000000e+00 : f32
    %34 = vector.broadcast %cst_25 : f32 to vector<8x256xf32>
    %35 = arith.maximumf %33, %34 : vector<8x256xf32>
    %c0_26 = arith.constant 0 : index
    %c16_27 = arith.constant 16 : index
    %c0_28 = arith.constant 0 : index
    %36 = vector.load %arg6[%c0_26, %c16_27, %c0_28] : memref<1x32x256xf32, #tpu.memory_space<vmem>>, vector<1x8x256xf32>
    %37 = vector.shape_cast %36 : vector<1x8x256xf32> to vector<8x256xf32>
    %38 = vector.shape_cast %35 : vector<8x256xf32> to vector<1x8x256xf32>
    tpu.vector_store %arg6[%c0_26, %c16_27, %c0_28], %38 {strides = array<i32>} : memref<1x32x256xf32, #tpu.memory_space<vmem>>, vector<1x8x256xf32>,
    %c0_29 = arith.constant 0 : index
    %c16_30 = arith.constant 16 : index
    %c0_31 = arith.constant 0 : index
    %39 = vector.load %arg1[%c0_29, %c16_30, %c0_31] : memref<1x24x256xf32, #tpu.memory_space<vmem>>, vector<1x8x256xf32>
    %40 = vector.shape_cast %39 : vector<1x8x256xf32> to vector<8x256xf32>
    %c24 = arith.constant 24 : index
    %c0_32 = arith.constant 0 : index
    %41 = vector.load %arg4[%c24, %c0_32] : memref<32x1xf32, #tpu.memory_space<vmem>>, vector<8x1xf32>
    %42 = vector.broadcast %41 : vector<8x1xf32> to vector<8x256xf32>
    %43 = arith.mulf %40, %42 : vector<8x256xf32>
    %c24_33 = arith.constant 24 : index
    %c0_34 = arith.constant 0 : index
    %44 = vector.load %arg5[%c24_33, %c0_34] : memref<32x1xf32, #tpu.memory_space<vmem>>, vector<8x1xf32>
    %45 = vector.broadcast %44 : vector<8x1xf32> to vector<8x256xf32>
    %46 = arith.addf %43, %45 : vector<8x256xf32>
    %cst_35 = arith.constant 0.000000e+00 : f32
    %47 = vector.broadcast %cst_35 : f32 to vector<8x256xf32>
    %48 = arith.maximumf %46, %47 : vector<8x256xf32>
    %c0_36 = arith.constant 0 : index
    %c24_37 = arith.constant 24 : index
    %c0_38 = arith.constant 0 : index
    %49 = vector.load %arg6[%c0_36, %c24_37, %c0_38] : memref<1x32x256xf32, #tpu.memory_space<vmem>>, vector<1x8x256xf32>
    %50 = vector.shape_cast %49 : vector<1x8x256xf32> to vector<8x256xf32>
    %51 = vector.shape_cast %48 : vector<8x256xf32> to vector<1x8x256xf32>
    tpu.vector_store %arg6[%c0_36, %c24_37, %c0_38], %51 {strides = array<i32>} : memref<1x32x256xf32, #tpu.memory_space<vmem>>, vector<1x8x256xf32>,
    return
  }
  func.func @transform_0(%arg0: i32) -> (i32, i32, i32) {
    %c0_i32 = arith.constant 0 : i32
    %c0_i32_0 = arith.constant 0 : i32
    %c0_i32_1 = arith.constant 0 : i32
    return %arg0, %c0_i32, %c0_i32_0 : i32, i32, i32
  }
  func.func @transform_1(%arg0: i32) -> (i32, i32, i32) {
    %c0_i32 = arith.constant 0 : i32
    %c0_i32_0 = arith.constant 0 : i32
    %c0_i32_1 = arith.constant 0 : i32
    return %arg0, %c0_i32, %c0_i32_0 : i32, i32, i32
  }
  func.func @transform_2(%arg0: i32) -> (i32, i32, i32) {
    %c0_i32 = arith.constant 0 : i32
    %c0_i32_0 = arith.constant 0 : i32
    %c0_i32_1 = arith.constant 0 : i32
    return %arg0, %c0_i32, %c0_i32_0 : i32, i32, i32
  }
  func.func @transform_3(%arg0: i32) -> (i32, i32) {
    %c0_i32 = arith.constant 0 : i32
    %c0_i32_0 = arith.constant 0 : i32
    %c0_i32_1 = arith.constant 0 : i32
    return %c0_i32, %c0_i32_0 : i32, i32
  }
  func.func @transform_4(%arg0: i32) -> (i32, i32) {
    %c0_i32 = arith.constant 0 : i32
    %c0_i32_0 = arith.constant 0 : i32
    %c0_i32_1 = arith.constant 0 : i32
    return %c0_i32, %c0_i32_0 : i32, i32
  }
  func.func @transform_5(%arg0: i32) -> (i32, i32, i32) {
    %c0_i32 = arith.constant 0 : i32
    %c0_i32_0 = arith.constant 0 : i32
    %c0_i32_1 = arith.constant 0 : i32
    return %arg0, %c0_i32, %c0_i32_0 : i32, i32, i32
  }
}

</mosaic_0001>

<bundles_post_ra>
// kernel: inception_forward.5
= control target key start
LH: loop header
LB: loop body
LE: loop exit
PB: predicated region body
PF: predicated region fallthrough
CT: control target
= control target key end

     0   :  { %s704_s18 = smov 0   ;;  %s770_s0 = inlined_call_operand.vmem [shape: f32[2,4,256], index: 0, kind: input, shape index: {}]   ;;  %s771_s1 = inlined_call_operand.vmem [shape: bf16[16,4], index: 1, kind: input, shape index: {}]   ;;  %s772_s2 = inlined_call_operand.vmem [shape: bf16[8,4], index: 2, kind: input, shape index: {}]   ;;  %s773_s3 = inlined_call_operand.vmem [shape: f32[2,24,256], index: 3, kind: output, shape index: {0}]   ;;  %s774_s4 = inlined_call_operand.vmem [shape: f32[2,24,1], index: 4, kind: output, shape index: {1}]   ;;  %s775_s5 = inlined_call_operand.vmem [shape: f32[2,24,1], index: 5, kind: output, shape index: {2}]  }
   0x1 LB: > { %s626_s19 = sadd.s32 4294967295, %s667_s18   ;;  %p630_p0 = scmp.ge.s32.totalorder %s667_s18, 1  ;;  %s667_s18 = sphi %s704_s18, %s16_s18  }
   0x2   : > { %p192_p1 = scmp.lt.s32.totalorder %s667_s18, 3 }
   0x4   : > { %p193_p2 = pnand %p630_p0, %p192_p1 }
   0x5   : > { %p230_p3 = scmp.lt.s32.totalorder (!%p193_p2), %s626_s19, 1  ;;  %s669_s24 = smov (!%p193_p2), 127   ;;  %v318_v2 = vlaneseq (!%p193_p2)  ;;  %vm351_vm0 = vcmask (!%p193_p2), 7168   ;;  %vm368_vm1 = vcmask (!%p193_p2), 1039360   ;;  %vm268_vm6 = vcmask (!%p193_p2), 1041408   ;;  %v660_v27 = vld [vmem:[%s771_s1] sm:$0xff] (!%p193_p2)  }
   0x6   : > { %196 = sbr.rel (%p193_p2) target bundleno = 642 (0x282), region = 32  ;;  %s670_s25 = smov (!%p193_p2), 1   ;;  %vm264_vm7 = vcmask (!%p193_p2), 31744   ;;  %v671_v28 = vmov (!%p193_p2), 0   ;;  %vm392_vm8 = vcmask (!%p193_p2), 130048   ;;  %vm401_vm9 = vcmask (!%p193_p2), 916480  }
   0x7   : > { %v319_v3 = vand.u32 (!%p193_p2), 127, %v318_v2  ;;  %307 = vmatprep.mubr.bf16.mxu0 (!%p193_p2), %v671_v28  ;;  %460 = vmatprep.mubr.bf16.mxu1 (!%p193_p2), %v671_v28  ;;  %s672_s28 = smov (!%p193_p2), 16   ;;  %s673_s29 = smov (!%p193_p2), 112   ;;  %v413_v48 = vld [vmem:[%s772_s2] sm:$0xf] (!%p193_p2) }
   0x9   : > { %v320_v4 = vadd.s32 (!%p193_p2), 128, %v319_v3  ;;  %v325_v5 = vand.u32 (!%p193_p2), 15, %v319_v3 }
   0xb   : > { %v332_v6 = vand.u32 (!%p193_p2), 15, %v320_v4  ;;  %vm718_vm2 = vcmp.ge.s32.totalorder (!%p193_p2), %v325_v5, 1  ;;  %vm723_vm3 = vcmp.le.s32.totalorder (!%p193_p2), %v325_v5, 14 }
   0xd   : > { %s783_s19 = smov (!%p230_p3, %s626_s19), 1  ;;  %vm727_vm4 = vcmp.le.s32.totalorder %v332_v6, 14  ;;  %vm346_vm5 = vcmp.ge.s32.totalorder %v332_v6, 1 }
   0xe   : > { %s643_s20 = sshll.u32 %s783_s19, 3  ;;  %s644_s7 = smul.u32 48, %s783_s19 }
   0xf   : > { %s234_s23 = scalar_lea.vmem %s770_s0, %s643_s20  ;;  %s645_s11 = smul.u32 24, %s783_s19 }
  0x10   : > { %v251_v0 = vld [vmem:[%s234_s23] sm:$0xff]  ;;  %s239_s10 = scalar_lea.vmem %s773_s3, %s644_s7 }
  0x11   : > { %364 = vrot.lane.b32.xlu1 %v251_v0, %s669_s24  ;;  %347 = vrot.lane.b32.xlu0 %v251_v0, %s670_s25  ;;  %v253_v1 = vcombine.high %v251_v0, %v251_v0  ;;  %v255_v12 = vpack.c.bf16 %v251_v0, %v251_v0  ;;  %s244_s14 = scalar_lea.vmem %s774_s4, %s645_s11  ;;  %s249_s17 = scalar_lea.vmem %s775_s5, %s645_s11 }
  0x13   : > { %v256_v11 = vpack.c.bf16 %v253_v1, %v253_v1  ;;  %v270_v17 = vsel %vm268_vm6, %v255_v12, 0 }
  0x15   : > { %366 = vrot.lane.b32.xlu1 %v253_v1, %s669_s24  ;;  %349 = vrot.lane.b32.xlu0 %v253_v1, %s670_s25 }
  0x16   : > { %637 = vmatprep.subr.msk.bf16.mxu0 %vm268_vm6, %v256_v11 }
  0x17   : > { %276 = vmatpush1.bf16.msra.mxu0 %v270_v17 }
  0x1a   : > { %638 = vmatmul.mubr.msk.bf16.vlgmr.msra.gmra.mrb[0].mxu0 %vm264_vm7, %v660_v27 }
  0x83   : > { %v365_v7 = vpop.permute.xlu1 %364  ;;  %v348_v8 = vpop.permute.xlu0 %347 }
  0x84   : > { %v355_v10 = vsel %vm351_vm0, -1e+30, %v348_v8 }
  0x85   : > { %v360_v18 = vsel %vm718_vm2, %v355_v10, -1e+30 }
  0x87   : > { %v367_v15 = vpop.permute.xlu1 %366  ;;  %v350_v16 = vpop.permute.xlu0 %349 }
  0x88   : > { %v369_v19 = vsel %vm368_vm1, %v365_v7, %v367_v15  ;;  %v372_v20 = vsel %vm368_vm1, %v367_v15, -1e+30  ;;  %v352_v21 = vsel %vm351_vm0, %v348_v8, %v350_v16 }
  0x89   : > { %v377_v22 = vsel %vm723_vm3, %v369_v19, -1e+30  ;;  %v378_v23 = vsel %vm727_vm4, %v372_v20, -1e+30  ;;  %v361_v24 = vsel %vm346_vm5, %v352_v21, -1e+30 }
  0x8a   : > { %v379_v25 = vmax.f32 %v360_v18, %v377_v22  ;;  %v380_v26 = vmax.f32 %v361_v24, %v378_v23 }
  0x8c   : > { %v383_v29 = vcombine.low %v379_v25, %v380_v26 }
  0x8e   : > { %v385_v30 = vmax.f32 %v251_v0, %v383_v29 }
  0x90   : > { %388 = vrot.lane.b32.xlu0 %v385_v30, %s672_s28  ;;  %v387_v31 = vcombine.high %v385_v30, %v385_v30 }
  0x92   : > { %390 = vrot.lane.b32.xlu1 %v387_v31, %s672_s28 }
  0x94   : > { %397 = vrot.lane.b32.xlu0 %v385_v30, %s673_s29 }
  0x96   : > { %399 = vrot.lane.b32.xlu1 %v387_v31, %s673_s29 }
  0xed   : > { %v309_v49 = vpop.f32.mrb[0].mxu0 }
  0xee   : > { %469 = vst [vmem:[%s239_s10] sm:$0xff] %v309_v49  ;;  %v311_v50 = vpop.f32.mrb[1].mxu0  ;;  %v487_v51 = vmul.f32 %v309_v49, %v309_v49 }
  0xef   : > { %470 = vst [vmem:[%s239_s10 + $0x8] sm:$0xff] %v311_v50  ;;  %v313_v52 = vpop.f32.mrb[2].mxu0  ;;  %v475_v53 = vadd.f32 %v311_v50, %v309_v49  ;;  %v488_v54 = vmul.f32 %v311_v50, %v311_v50 }
  0xf0   : > { %471 = vst [vmem:[%s239_s10 + $0x10] sm:$0xff] %v313_v52  ;;  %v315_v55 = vpop.f32.mrb[3].mxu0  ;;  %v489_v56 = vmul.f32 %v313_v52, %v313_v52 }
  0xf1   : > { %472 = vst [vmem:[%s239_s10 + $0x18] sm:$0xff] %v315_v55  ;;  %v490_v57 = vmul.f32 %v315_v55, %v315_v55  ;;  %476 = vadd.xlane.f32.xlu0 %v475_v53  ;;  %v478_v58 = vadd.f32 %v315_v55, %v313_v52  ;;  %v493_v59 = vadd.f32 %v488_v54, %v487_v51 }
  0xf3   : > { %479 = vadd.xlane.f32.xlu1 %v478_v58  ;;  %v496_v60 = vadd.f32 %v490_v57, %v489_v56 }
  0xf5   : > { %494 = vadd.xlane.f32.xlu0 %v493_v59 }
  0xf7   : > { %497 = vadd.xlane.f32.xlu1 %v496_v60 }
 0x102   : > { %v389_v32 = vpop.permute.xlu0 %388 }
 0x103   : > { %v396_v36 = vsel %vm392_vm8, -1e+30, %v389_v32 }
 0x104   : > { %v391_v33 = vpop.permute.xlu1 %390 }
 0x105   : > { %v393_v37 = vsel %vm392_vm8, %v389_v32, %v391_v33 }
 0x106   : > { %v398_v34 = vpop.permute.xlu0 %397 }
 0x108   : > { %v400_v35 = vpop.permute.xlu1 %399 }
 0x109   : > { %v402_v38 = vsel %vm401_vm9, %v398_v34, %v400_v35  ;;  %v405_v39 = vsel %vm401_vm9, %v400_v35, -1e+30 }
 0x10a   : > { %v406_v40 = vmax.f32 %v396_v36, %v402_v38  ;;  %v407_v41 = vmax.f32 %v393_v37, %v405_v39 }
 0x10c   : > { %v410_v42 = vcombine.low %v406_v40, %v407_v41 }
 0x10e   : > { %v412_v43 = vmax.f32 %v385_v30, %v410_v42 }
 0x110   : > { %v415_v44 = vcombine.high %v412_v43, %v412_v43  ;;  %v417_v45 = vpack.c.bf16 %v412_v43, %v412_v43 }
 0x112   : > { %v418_v46 = vpack.c.bf16 %v415_v44, %v415_v44  ;;  %v423_v47 = vsel %vm268_vm6, %v417_v45, 0 }
 0x114   : > { %639 = vmatprep.subr.msk.bf16.mxu1 %vm268_vm6, %v418_v46 }
 0x115   : > { %429 = vmatpush1.bf16.msra.mxu1 %v423_v47 }
 0x118   : > { %640 = vmatmul.mubr.msk.bf16.vlgmr.msra.gmra.mrb[0].mxu1 %vm264_vm7, %v413_v48 }
 0x17e   : > { %v477_v5 = vpop.xlane.xlu0 %476 }
 0x17f   : > { %484 = vst.msk [vmem:[%s244_s14] sm:$0xff] %vm351_vm0, %v477_v5 }
 0x180   : > { %v480_v6 = vpop.xlane.xlu1 %479 }
 0x181   : > { %485 = vst.msk [vmem:[%s244_s14 + $0x8] sm:$0xff] %vm351_vm0, %v480_v6 }
 0x182   : > { %v495_v7 = vpop.xlane.xlu0 %494 }
 0x183   : > { %502 = vst.msk [vmem:[%s249_s17] sm:$0xff] %vm351_vm0, %v495_v7 }
 0x184   : > { %v498_v8 = vpop.xlane.xlu1 %497 }
 0x185   : > { %503 = vst.msk [vmem:[%s249_s17 + $0x8] sm:$0xff] %vm351_vm0, %v498_v8 }
 0x1eb   : > { %v462_v61 = vpop.f32.mrb[0].mxu1 }
 0x1ec   : > { %473 = vst [vmem:[%s239_s10 + $0x20] sm:$0xff] %v462_v61  ;;  %v464_v62 = vpop.f32.mrb[1].mxu1  ;;  %v491_v63 = vmul.f32 %v462_v61, %v462_v61 }
 0x1ed   : > { %474 = vst [vmem:[%s239_s10 + $0x28] sm:$0xff] %v464_v62  ;;  %v466_v0 = vpop.f32.mrb[2].mxu1  ;;  %v481_v1 = vadd.f32 %v464_v62, %v462_v61  ;;  %v492_v2 = vmul.f32 %v464_v62, %v464_v62 }
 0x1ee   : > { %v467_v3 = vpop.f32.mrb[3].mxu1 }
 0x1ef   : > { %482 = vadd.xlane.f32.xlu0 %v481_v1  ;;  %v499_v4 = vadd.f32 %v492_v2, %v491_v63 }
 0x1f3   : > { %500 = vadd.xlane.f32.xlu0 %v499_v4 }
 0x27c   : > { %v483_v9 = vpop.xlane.xlu0 %482 }
 0x27d   : > { %486 = vst.msk [vmem:[%s244_s14 + $0x10] sm:$0xff] %vm351_vm0, %v483_v9 }
 0x280   : > { %v501_v10 = vpop.xlane.xlu0 %500 }
 0x281   : > { %504 = vst.msk [vmem:[%s249_s17 + $0x10] sm:$0xff] %vm351_vm0, %v501_v10 }
 0x282 PF: > { %s16_s18 = sadd.s32 1, %s667_s18  }
 0x283   : > { %p13_p4 = scmp.ge.s32.totalorder %s16_s18, 4  }
 0x285   :  { %15 = sbr.rel (!%p13_p4) target bundleno = 1 (0x1), region = 86 }

// kernel: inception_forward.6
= control target key start
LH: loop header
LB: loop body
LE: loop exit
PB: predicated region body
PF: predicated region fallthrough
CT: control target
= control target key end

     0   :  { %s762_s21 = smov 0   ;;  %s810_s0 = inlined_call_operand.vmem [shape: f32[2,24,256], index: 0, kind: input, shape index: {}]   ;;  %s811_s1 = inlined_call_operand.vmem [shape: f32[4,1], index: 1, kind: input, shape index: {}]   ;;  %s812_s2 = inlined_call_operand.vmem [shape: f32[4,1], index: 2, kind: input, shape index: {}]   ;;  %s813_s3 = inlined_call_operand.vmem [shape: bf16[8,36], index: 3, kind: input, shape index: {}]   ;;  %s814_s4 = inlined_call_operand.vmem [shape: f32[2,8,256], index: 4, kind: output, shape index: {0}]   ;;  %s815_s5 = inlined_call_operand.vmem [shape: f32[2,8,1], index: 5, kind: output, shape index: {1}]   ;;  %s816_s6 = inlined_call_operand.vmem [shape: f32[2,8,1], index: 6, kind: output, shape index: {2}]  }
   0x1 LB: > { %s656_s22 = sadd.s32 4294967295, %s716_s21   ;;  %p660_p0 = scmp.ge.s32.totalorder %s716_s21, 1  ;;  %s716_s21 = sphi %s762_s21, %s17_s21  }
   0x2   : > { %p217_p1 = scmp.lt.s32.totalorder %s716_s21, 3 }
   0x4   : > { %p218_p2 = pnand %p660_p0, %p217_p1 }
   0x5   : > { %v276_v0 = vld [vmem:[%s811_s1] sm:$0xf] (!%p218_p2)  ;;  %v718_v1 = vmov (!%p218_p2), 0   ;;  %p255_p3 = scmp.lt.s32.totalorder (!%p218_p2), %s656_s22, 1  ;;  %v294_v3 = vlaneseq (!%p218_p2)  ;;  %s719_s7 = smov (!%p218_p2), 15   ;;  %vm356_vm4 = vcmask (!%p218_p2), 1045508  }
   0x6   : > { %221 = sbr.rel (%p218_p2) target bundleno = 654 (0x28e), region = 36  ;;  %701 = vset.pattern.permute.xlu0 (!%p218_p2), %v718_v1  ;;  %337 = vst [vmem:[#allocation2] sm:$0xff] (!%p218_p2), %v718_v1  ;;  %338 = vst [vmem:[#allocation2 + $0x8] sm:$0xff] (!%p218_p2), %v718_v1  ;;  %517 = vmatprep.mubr.bf16.mxu0 (!%p218_p2), %v718_v1  ;;  %v284_v2 = vld [vmem:[%s812_s2] sm:$0xf] (!%p218_p2)  ;;  %s720_s8 = smov (!%p218_p2), 17  }
   0x7   : > { %339 = vst [vmem:[#allocation2 + $0x10] sm:$0xff] (!%p218_p2), %v718_v1  ;;  %340 = vst [vmem:[#allocation2 + $0x18] sm:$0xff] (!%p218_p2), %v718_v1  ;;  %279 = vperm.xlu0 (!%p218_p2), %701, %v276_v0   ;;  %v295_v4 = vand.u32 (!%p218_p2), 127, %v294_v3  ;;  %s721_s9 = smov (!%p218_p2), 127   ;;  %s722_s10 = smov (!%p218_p2), 16   ;;  %vm390_vm5 = vcmask (!%p218_p2), 1041528  }
   0x8   : > { %341 = vst [vmem:[#allocation2 + $0x20] sm:$0x33] (!%p218_p2), %v718_v1  ;;  %s723_s11 = smov (!%p218_p2), 112   ;;  %s724_s12 = smov (!%p218_p2), 1   ;;  %vm355_vm6 = vcmask (!%p218_p2), 1041544   ;;  %vm387_vm7 = vcmask (!%p218_p2), 121856   ;;  %vm391_vm8 = vmor (!%p218_p2), %vm356_vm4, %vm390_vm5 }
   0x9   : > { %v296_v5 = vadd.s32 (!%p218_p2), 128, %v295_v4  ;;  %v301_v9 = vand.u32 (!%p218_p2), 15, %v295_v4  ;;  %s725_s13 = smov (!%p218_p2), 113   ;;  %s726_s14 = smov (!%p218_p2), 111   ;;  %vm352_vm9 = vcmask (!%p218_p2), 138240   ;;  %vm357_vm10 = vmor (!%p218_p2), %vm356_vm4, %vm355_vm6  ;;  %vm412_vm11 = vcmask (!%p218_p2), 1043458  }
   0xa   : > { %vm413_vm12 = vcmask (!%p218_p2), 1039366   ;;  %vm373_vm13 = vcmask (!%p218_p2), 1043586   ;;  %vm374_vm14 = vcmask (!%p218_p2), 1047558   ;;  %vm409_vm15 = vcmask (!%p218_p2), 1039360   ;;  %v444_v60 = vld [vmem:[%s813_s3] sm:$0xf] (!%p218_p2) }
   0xb   : > { %287 = vperm.xlu0 (!%p218_p2), %701, %v284_v2   ;;  %v308_v10 = vand.u32 (!%p218_p2), 15, %v296_v5  ;;  %vm329_vm0 = vcmp.ge.s32.totalorder (!%p218_p2), %v301_v9, 1  ;;  %vm321_vm2 = vcmp.le.s32.totalorder (!%p218_p2), %v301_v9, 14  ;;  %vm400_vm4 = vcmask (!%p218_p2), 1043466  }
   0xc   : > { %vm429_vm5 = vcmask (!%p218_p2), 916480  }
   0xd   : > { %s818_s22 = smov (!%p255_p3, %s656_s22), 1  ;;  %vm330_vm1 = vcmp.ge.s32.totalorder %v308_v10, 1  ;;  %vm322_vm3 = vcmp.le.s32.totalorder %v308_v10, 14 }
   0xe   : > { %s683_s27 = smul.u32 48, %s818_s22  ;;  %s679_s17 = sshll.u32 %s818_s22, 4 }
   0xf   : > { %s264_s20 = scalar_lea.vmem %s814_s4, %s679_s17  ;;  %s664_s23 = sshll.u32 %s818_s22, 3 }
  0x10   : > { %s259_s30 = scalar_lea.vmem %s810_s0, %s683_s27  ;;  %s268_s26 = scalar_lea.vmem %s815_s5, %s664_s23 }
  0x11   : > { %v274_v7 = vld [vmem:[%s259_s30 + $0x10] sm:$0xf]  ;;  %v275_v8 = vld [vmem:[%s259_s30 + $0x18] sm:$0xf]  ;;  %s272_s29 = scalar_lea.vmem %s816_s6, %s664_s23 }
  0x86   : > { %v280_v6 = vpop.permute.xlu0 %279 }
  0x87   : > { %v282_v11 = vmul.f32 %v280_v6, %v274_v7  ;;  %v283_v12 = vmul.f32 %v280_v6, %v275_v8 }
  0x8a   : > { %v288_v13 = vpop.permute.xlu0 %287 }
  0x8b   : > { %v290_v14 = vadd.f32 %v288_v13, %v282_v11  ;;  %v291_v15 = vadd.f32 %v288_v13, %v283_v12 }
  0x8d   : > { %v292_v16 = vmax.f32 %v290_v14, 0.0  ;;  %v293_v17 = vmax.f32 %v291_v15, 0.0 }
  0x8f   : > { %v335_v18 = vsel %vm329_vm0, %v292_v16, 0.0  ;;  %v336_v19 = vsel %vm330_vm1, %v293_v17, 0.0  ;;  %v327_v20 = vsel %vm321_vm2, %v292_v16, 0.0  ;;  %v328_v21 = vsel %vm322_vm3, %v293_v17, 0.0  ;;  %vm414_vm0 = vmor %vm413_vm12, %vm412_vm11 }
  0x90   : > { %v682_v22 = vpack.c.bf16 %v336_v19, %v335_v18  ;;  %v680_v23 = vpack.c.bf16 %v328_v21, %v327_v20  ;;  %v681_v24 = vpack.c.bf16 %v293_v17, %v292_v16  ;;  %vm370_vm1 = vcmask 130048   ;;  %vm375_vm2 = vmor %vm374_vm14, %vm373_vm13 }
  0x91   : > { %vm432_vm3 = vcmask 916486   ;;  %vm419_vm12 = vcmask 924672  }
  0x92   : > { %384 = vrot.lane.b32.xlu0 %v682_v22, %s719_s7  ;;  %349 = vrot.lane.b32.xlu1 %v680_v23, %s720_s8  ;;  %404 = vst [vmem:[#allocation2 + $0x10] sm:$0x33] %v681_v24  ;;  %v405_v25 = vrot.slane %v682_v22, 6  ;;  %v366_v26 = vrot.slane %v681_v24, 6  ;;  %v393_v27 = vrot.slane %v680_v23, 6  ;;  %vm433_vm6 = vmor %vm432_vm3, %vm412_vm11  ;;  %vm441_vm11 = vcmask 906244  }
  0x96   : > { %406 = vrot.lane.b32.xlu0 %v405_v25, %s721_s9  ;;  %367 = vrot.lane.b32.xlu1 %v366_v26, %s722_s10 }
  0x9a   : > { %426 = vrot.lane.b32.xlu0 %v366_v26, %s723_s11  ;;  %394 = vrot.lane.b32.xlu1 %v393_v27, %s724_s12 }
  0x9e   : > { %416 = vrot.lane.b32.xlu1 %v680_v23, %s725_s13 }
  0xa2   : > { %435 = vrot.lane.b32.xlu1 %v682_v22, %s726_s14 }
 0x104   : > { %v385_v28 = vpop.permute.xlu0 %384  ;;  %v350_v29 = vpop.permute.xlu1 %349 }
 0x105   : > { %v386_v30 = vrot.slane %v385_v28, 4  ;;  %v351_v31 = vrot.slane %v350_v29, 4 }
 0x107   : > { %v388_v32 = vsel %vm387_vm7, %v386_v30, %v385_v28  ;;  %v353_v33 = vsel %vm352_vm9, %v351_v31, %v350_v29  ;;  %vm397_vm7 = vcmask 7168   ;;  %vm422_vm9 = vcmask 1041408  }
 0x108   : > { %392 = vst.msk [vmem:[#allocation2 + $0x8] sm:$0x33] %vm391_vm8, %v388_v32  ;;  %v407_v34 = vpop.permute.xlu0 %406  ;;  %v368_v35 = vpop.permute.xlu1 %367  ;;  %vm401_vm8 = vmor %vm374_vm14, %vm400_vm4 }
 0x109   : > { %358 = vst.msk [vmem:[#allocation2] sm:$0x33] %vm357_vm10, %v353_v33  ;;  %v408_v36 = vrot.slane %v407_v34, 4  ;;  %v369_v37 = vrot.slane %v368_v35, 4  ;;  %vm423_vm10 = vcmask 922628   ;;  %vm442_vm14 = vmor %vm441_vm11, %vm422_vm9 }
 0x10a   : > { %vm424_vm13 = vmor %vm423_vm10, %vm422_vm9 }
 0x10b   : > { %v410_v38 = vsel %vm409_vm15, %v407_v34, %v408_v36  ;;  %v371_v39 = vsel %vm370_vm1, %v369_v37, %v368_v35  ;;  %vm438_vm15 = vcmask 908288  }
 0x10c   : > { %415 = vst.msk [vmem:[#allocation2 + $0x10] sm:$0xcc] %vm414_vm0, %v410_v38  ;;  %v427_v40 = vpop.permute.xlu0 %426  ;;  %v395_v41 = vpop.permute.xlu1 %394  ;;  %vm475_vm0 = vcmask 293888  }
 0x10d   : > { %376 = vst.msk [vmem:[#allocation2] sm:$0xcc] %vm375_vm2, %v371_v39  ;;  %v428_v42 = vrot.slane %v427_v40, 4  ;;  %v396_v43 = vrot.slane %v395_v41, 4 }
 0x10f   : > { %v430_v44 = vsel %vm429_vm5, %v427_v40, %v428_v42  ;;  %v398_v45 = vsel %vm397_vm7, %v396_v43, %v395_v41 }
 0x110   : > { %434 = vst.msk [vmem:[#allocation2 + $0x18] sm:$0xcc] %vm433_vm6, %v430_v44  ;;  %v417_v46 = vpop.permute.xlu1 %416 }
 0x111   : > { %402 = vst.msk [vmem:[#allocation2 + $0x8] sm:$0xcc] %vm401_vm8, %v398_v45  ;;  %v418_v47 = vrot.slane %v417_v46, 4 }
 0x113   : > { %v420_v48 = vsel %vm419_vm12, %v417_v46, %v418_v47 }
 0x114   : > { %425 = vst.msk [vmem:[#allocation2 + $0x18] sm:$0x33] %vm424_vm13, %v420_v48  ;;  %v436_v49 = vpop.permute.xlu1 %435 }
 0x115   : > { %v437_v50 = vrot.slane %v436_v49, 4 }
 0x117   : > { %v439_v51 = vsel %vm438_vm15, %v436_v49, %v437_v50 }
 0x118   : > { %v702_v52 = vld [vmem:[#allocation2 + $0x4] ss:$8 sps:$4 sm:$0xff]   ;;  %v704_v53 = vld [vmem:[#allocation2] ss:$8 sps:$4 sm:$0xff]   ;;  %443 = vst.msk [vmem:[#allocation2 + $0x20] sm:$0x33] %vm442_vm14, %v439_v51 }
 0x119   : > { %485 = vmatprep.subr.bf16.mxu0 %v702_v52 }
 0x11a   : > { %486 = vmatpush1.bf16.msra.mxu0 %v704_v53 }
 0x11b   : > { %v705_v54 = vld [vmem:[#allocation2 + $0x14] ss:$8 sps:$4 sm:$0xff]   ;;  %v707_v55 = vld [vmem:[#allocation2 + $0x10] ss:$8 sps:$4 sm:$0xff]  }
 0x11c   : > { %487 = vmatprep.subr.bf16.mxu0 %v705_v54 }
 0x11e   : > { %488 = vmatpush1.bf16.msra.mxu0 %v707_v55 }
 0x11f   : > { %v449_v56 = vld [vmem:[#allocation2 + $0x20] sm:$0x33] }
 0x120   : > { %v674_v57 = vcombine.high %v449_v56, %v449_v56  ;;  %v673_v58 = vcombine.low %v449_v56, %v449_v56 }
 0x122   : > { %675 = vmatprep.subr.msk.bf16.mxu0 %vm422_vm9, %v674_v57  ;;  %v480_v59 = vsel %vm422_vm9, %v673_v58, 0 }
 0x123   : > { %490 = vmatpush1.bf16.msra.mxu0 %v480_v59 }
 0x126   : > { %676 = vmatmul.mubr.msk.bf16.vlgmr.msra.gmra.mrb[0].mxu0 %vm475_vm0, %v444_v60 }
 0x1f9   : > { %v519_v61 = vpop.f32.mrb[0].mxu0 }
 0x1fa   : > { %526 = vst [vmem:[%s264_s20] sm:$0xff] %v519_v61  ;;  %v521_v62 = vpop.f32.mrb[1].mxu0  ;;  %v533_v63 = vmul.f32 %v519_v61, %v519_v61 }
 0x1fb   : > { %527 = vst [vmem:[%s264_s20 + $0x8] sm:$0xff] %v521_v62  ;;  %v523_v0 = vpop.f32.mrb[2].mxu0  ;;  %v528_v1 = vadd.f32 %v521_v62, %v519_v61  ;;  %v534_v2 = vmul.f32 %v521_v62, %v521_v62 }
 0x1fc   : > { %v524_v3 = vpop.f32.mrb[3].mxu0 }
 0x1fd   : > { %529 = vadd.xlane.f32.xlu0 %v528_v1  ;;  %v535_v4 = vadd.f32 %v534_v2, %v533_v63 }
 0x1ff   : > { %536 = vadd.xlane.f32.xlu1 %v535_v4 }
 0x28a   : > { %v530_v5 = vpop.xlane.xlu0 %529 }
 0x28b   : > { %532 = vst.msk [vmem:[%s268_s26] sm:$0xff] %vm397_vm7, %v530_v5 }
 0x28c   : > { %v537_v6 = vpop.xlane.xlu1 %536 }
 0x28d   : > { %538 = vst.msk [vmem:[%s272_s29] sm:$0xff] %vm397_vm7, %v537_v6 }
 0x28e PF: > { %s17_s21 = sadd.s32 1, %s716_s21  }
 0x28f   : > { %p14_p4 = scmp.ge.s32.totalorder %s17_s21, 4  }
 0x291   :  { %16 = sbr.rel (!%p14_p4) target bundleno = 1 (0x1), region = 90 }

// kernel: inception_forward.7
= control target key start
LH: loop header
LB: loop body
LE: loop exit
PB: predicated region body
PF: predicated region fallthrough
CT: control target
= control target key end

     0   :  { %s768_s21 = smov 0   ;;  %s818_s0 = inlined_call_operand.vmem [shape: f32[2,24,256], index: 0, kind: input, shape index: {}]   ;;  %s819_s1 = inlined_call_operand.vmem [shape: f32[4,1], index: 1, kind: input, shape index: {}]   ;;  %s820_s2 = inlined_call_operand.vmem [shape: f32[4,1], index: 2, kind: input, shape index: {}]   ;;  %s821_s3 = inlined_call_operand.vmem [shape: bf16[8,36], index: 3, kind: input, shape index: {}]   ;;  %s822_s4 = inlined_call_operand.vmem [shape: f32[2,8,256], index: 4, kind: output, shape index: {0}]   ;;  %s823_s5 = inlined_call_operand.vmem [shape: f32[2,8,1], index: 5, kind: output, shape index: {1}]   ;;  %s824_s6 = inlined_call_operand.vmem [shape: f32[2,8,1], index: 6, kind: output, shape index: {2}]  }
   0x1 LB: > { %s661_s22 = sadd.s32 4294967295, %s722_s21   ;;  %p665_p0 = scmp.ge.s32.totalorder %s722_s21, 1  ;;  %s722_s21 = sphi %s768_s21, %s17_s21  }
   0x2   : > { %p217_p1 = scmp.lt.s32.totalorder %s722_s21, 3 }
   0x4   : > { %p218_p2 = pnand %p665_p0, %p217_p1 }
   0x5   : > { %v276_v0 = vld [vmem:[%s819_s1] sm:$0xf] (!%p218_p2)  ;;  %v724_v1 = vmov (!%p218_p2), 0   ;;  %p255_p3 = scmp.lt.s32.totalorder (!%p218_p2), %s661_s22, 1  ;;  %v296_v3 = vlaneseq (!%p218_p2)  ;;  %s725_s7 = smov (!%p218_p2), 16   ;;  %vm376_vm4 = vcmask (!%p218_p2), 1043586  }
   0x6   : > { %221 = sbr.rel (%p218_p2) target bundleno = 655 (0x28f), region = 36  ;;  %707 = vset.pattern.permute.xlu0 (!%p218_p2), %v724_v1  ;;  %339 = vst [vmem:[#allocation2] sm:$0xff] (!%p218_p2), %v724_v1  ;;  %340 = vst [vmem:[#allocation2 + $0x8] sm:$0xff] (!%p218_p2), %v724_v1  ;;  %522 = vmatprep.mubr.bf16.mxu0 (!%p218_p2), %v724_v1  ;;  %v285_v2 = vld [vmem:[%s820_s2] sm:$0xf] (!%p218_p2)  ;;  %s726_s8 = smov (!%p218_p2), 127  }
   0x7   : > { %341 = vst [vmem:[#allocation2 + $0x10] sm:$0xff] (!%p218_p2), %v724_v1  ;;  %342 = vst [vmem:[#allocation2 + $0x18] sm:$0xff] (!%p218_p2), %v724_v1  ;;  %279 = vperm.xlu0 (!%p218_p2), %707, %v276_v0   ;;  %v297_v4 = vand.u32 (!%p218_p2), 127, %v296_v3  ;;  %s727_s9 = smov (!%p218_p2), 1   ;;  %s728_s10 = smov (!%p218_p2), 15   ;;  %vm377_vm5 = vcmask (!%p218_p2), 1047558  }
   0x8   : > { %343 = vst [vmem:[#allocation2 + $0x20] sm:$0x33] (!%p218_p2), %v724_v1  ;;  %s729_s11 = smov (!%p218_p2), 17   ;;  %s730_s12 = smov (!%p218_p2), 112   ;;  %vm417_vm6 = vcmask (!%p218_p2), 1043458   ;;  %vm418_vm7 = vcmask (!%p218_p2), 1039366   ;;  %vm378_vm9 = vmor (!%p218_p2), %vm377_vm5, %vm376_vm4 }
   0x9   : > { %v298_v6 = vadd.s32 (!%p218_p2), 128, %v297_v4  ;;  %v303_v11 = vand.u32 (!%p218_p2), 15, %v297_v4  ;;  %s731_s13 = smov (!%p218_p2), 113   ;;  %s732_s14 = smov (!%p218_p2), 111   ;;  %vm373_vm8 = vcmask (!%p218_p2), 130048   ;;  %vm414_vm10 = vcmask (!%p218_p2), 1039360   ;;  %vm419_vm11 = vmor (!%p218_p2), %vm418_vm7, %vm417_vm6 }
   0xa   : > { %vm404_vm12 = vcmask (!%p218_p2), 1043466   ;;  %vm360_vm13 = vcmask (!%p218_p2), 1045508   ;;  %vm395_vm14 = vcmask (!%p218_p2), 1041528   ;;  %vm401_vm15 = vcmask (!%p218_p2), 7168   ;;  %v449_v0 = vld [vmem:[%s821_s3] sm:$0xf] (!%p218_p2) }
   0xb   : > { %288 = vperm.xlu0 (!%p218_p2), %707, %v285_v2   ;;  %v310_v12 = vand.u32 (!%p218_p2), 15, %v298_v6  ;;  %vm331_vm0 = vcmp.ge.s32.totalorder (!%p218_p2), %v303_v11, 1  ;;  %vm323_vm2 = vcmp.le.s32.totalorder (!%p218_p2), %v303_v11, 14  ;;  %vm437_vm4 = vcmask (!%p218_p2), 916486  }
   0xc   : > { %vm356_vm7 = vcmask (!%p218_p2), 138240  }
   0xd   : > { %s826_s22 = smov (!%p255_p3, %s661_s22), 1  ;;  %vm332_vm1 = vcmp.ge.s32.totalorder %v310_v12, 1  ;;  %vm324_vm3 = vcmp.le.s32.totalorder %v310_v12, 14 }
   0xe   : > { %s689_s27 = smul.u32 48, %s826_s22  ;;  %s685_s17 = sshll.u32 %s826_s22, 4 }
   0xf   : > { %s264_s20 = scalar_lea.vmem %s822_s4, %s685_s17  ;;  %s669_s23 = sshll.u32 %s826_s22, 3 }
  0x10   : > { %s259_s30 = scalar_lea.vmem %s818_s0, %s689_s27  ;;  %s268_s26 = scalar_lea.vmem %s823_s5, %s669_s23 }
  0x11   : > { %v274_v8 = vld [vmem:[%s259_s30 + $0x10] sm:$0xf0]  ;;  %v275_v9 = vld [vmem:[%s259_s30 + $0x18] sm:$0xf0]  ;;  %s272_s29 = scalar_lea.vmem %s824_s6, %s669_s23 }
  0x86   : > { %v280_v5 = vpop.permute.xlu0 %279 }
  0x87   : > { %v281_v7 = vrot.slane %v280_v5, 4 }
  0x89   : > { %v283_v13 = vmul.f32 %v281_v7, %v274_v8  ;;  %v284_v14 = vmul.f32 %v281_v7, %v275_v9 }
  0x8a   : > { %v289_v10 = vpop.permute.xlu0 %288 }
  0x8b   : > { %v290_v15 = vrot.slane %v289_v10, 4 }
  0x8d   : > { %v292_v16 = vadd.f32 %v290_v15, %v283_v13  ;;  %v293_v17 = vadd.f32 %v290_v15, %v284_v14 }
  0x8f   : > { %v294_v18 = vmax.f32 %v292_v16, 0.0  ;;  %v295_v19 = vmax.f32 %v293_v17, 0.0 }
  0x91   : > { %v687_v20 = vpack.c.bf16 %v295_v19, %v294_v18  ;;  %v337_v21 = vsel %vm331_vm0, %v294_v18, 0.0  ;;  %v338_v22 = vsel %vm332_vm1, %v295_v19, 0.0  ;;  %v329_v23 = vsel %vm323_vm2, %v294_v18, 0.0  ;;  %vm405_vm0 = vmor %vm377_vm5, %vm404_vm12 }
  0x92   : > { %v688_v24 = vpack.c.bf16 %v338_v22, %v337_v21  ;;  %v330_v25 = vsel %vm324_vm3, %v295_v19, 0.0  ;;  %vm392_vm1 = vcmask 121856   ;;  %vm396_vm2 = vmor %vm360_vm13, %vm395_vm14  ;;  %vm359_vm3 = vcmask 1041544  }
  0x93   : > { %370 = vrot.lane.b32.xlu1 %v687_v20, %s725_s7  ;;  %v674_v26 = vrot.slane %v687_v20, 10  ;;  %v686_v27 = vpack.c.bf16 %v330_v25, %v329_v23  ;;  %vm438_vm5 = vmor %vm437_vm4, %vm417_vm6  ;;  %vm424_vm12 = vcmask 924672   ;;  %vm480_vm6 = vcmask 293888  }
  0x94   : > { %411 = vrot.lane.b32.xlu0 %v688_v24, %s726_s8  ;;  %v387_v28 = vrot.slane %v688_v24, 6 }
  0x95   : > { %410 = vst [vmem:[#allocation2 + $0x10] sm:$0x33] %v674_v26  ;;  %v351_v29 = vrot.slane %v686_v27, 6 }
  0x96   : > { %v388_v30 = vrot.slane %v387_v28, 4 }
  0x97   : > { %398 = vrot.lane.b32.xlu1 %v686_v27, %s727_s9  ;;  %v352_v31 = vrot.slane %v351_v29, 4 }
  0x98   : > { %389 = vrot.lane.b32.xlu0 %v388_v30, %s728_s10 }
  0x9b   : > { %353 = vrot.lane.b32.xlu1 %v352_v31, %s729_s11 }
  0x9c   : > { %431 = vrot.lane.b32.xlu0 %v687_v20, %s730_s12 }
  0x9f   : > { %421 = vrot.lane.b32.xlu1 %v352_v31, %s731_s13 }
  0xa3   : > { %440 = vrot.lane.b32.xlu1 %v388_v30, %s732_s14 }
 0x105   : > { %v371_v32 = vpop.permute.xlu1 %370 }
 0x106   : > { %v372_v33 = vrot.slane %v371_v32, 4  ;;  %v412_v34 = vpop.permute.xlu0 %411 }
 0x107   : > { %v413_v35 = vrot.slane %v412_v34, 4 }
 0x108   : > { %v374_v36 = vsel %vm373_vm8, %v372_v33, %v371_v32  ;;  %vm361_vm8 = vmor %vm360_vm13, %vm359_vm3  ;;  %vm443_vm13 = vcmask 908288  }
 0x109   : > { %379 = vst.msk [vmem:[#allocation2] sm:$0xcc] %vm378_vm9, %v374_v36  ;;  %v415_v37 = vsel %vm414_vm10, %v412_v34, %v413_v35  ;;  %v399_v38 = vpop.permute.xlu1 %398  ;;  %vm434_vm9 = vcmask 916480   ;;  %vm427_vm10 = vcmask 1041408  }
 0x10a   : > { %420 = vst.msk [vmem:[#allocation2 + $0x10] sm:$0xcc] %vm419_vm11, %v415_v37  ;;  %v400_v39 = vrot.slane %v399_v38, 4  ;;  %v390_v40 = vpop.permute.xlu0 %389  ;;  %vm428_vm11 = vcmask 922628  }
 0x10b   : > { %v391_v41 = vrot.slane %v390_v40, 4  ;;  %vm429_vm14 = vmor %vm428_vm11, %vm427_vm10 }
 0x10c   : > { %v402_v42 = vsel %vm401_vm15, %v400_v39, %v399_v38 }
 0x10d   : > { %406 = vst.msk [vmem:[#allocation2 + $0x8] sm:$0xcc] %vm405_vm0, %v402_v42  ;;  %v393_v43 = vsel %vm392_vm1, %v391_v41, %v390_v40  ;;  %v354_v44 = vpop.permute.xlu1 %353  ;;  %vm446_vm0 = vcmask 906244  }
 0x10e   : > { %397 = vst.msk [vmem:[#allocation2 + $0x8] sm:$0x33] %vm396_vm2, %v393_v43  ;;  %v355_v45 = vrot.slane %v354_v44, 4  ;;  %v432_v46 = vpop.permute.xlu0 %431  ;;  %vm447_vm1 = vmor %vm446_vm0, %vm427_vm10 }
 0x10f   : > { %v433_v47 = vrot.slane %v432_v46, 4 }
 0x110   : > { %v357_v48 = vsel %vm356_vm7, %v355_v45, %v354_v44 }
 0x111   : > { %362 = vst.msk [vmem:[#allocation2] sm:$0x33] %vm361_vm8, %v357_v48  ;;  %v435_v49 = vsel %vm434_vm9, %v432_v46, %v433_v47  ;;  %v422_v50 = vpop.permute.xlu1 %421 }
 0x112   : > { %439 = vst.msk [vmem:[#allocation2 + $0x18] sm:$0xcc] %vm438_vm5, %v435_v49  ;;  %v423_v51 = vrot.slane %v422_v50, 4 }
 0x114   : > { %v425_v52 = vsel %vm424_vm12, %v422_v50, %v423_v51 }
 0x115   : > { %430 = vst.msk [vmem:[#allocation2 + $0x18] sm:$0x33] %vm429_vm14, %v425_v52  ;;  %v441_v53 = vpop.permute.xlu1 %440 }
 0x116   : > { %v442_v54 = vrot.slane %v441_v53, 4 }
 0x118   : > { %v444_v55 = vsel %vm443_vm13, %v441_v53, %v442_v54  ;;  %v708_v56 = vld [vmem:[#allocation2 + $0x4] ss:$8 sps:$4 sm:$0xff]   ;;  %v710_v57 = vld [vmem:[#allocation2] ss:$8 sps:$4 sm:$0xff]  }
 0x119   : > { %448 = vst.msk [vmem:[#allocation2 + $0x20] sm:$0x33] %vm447_vm1, %v444_v55  ;;  %490 = vmatprep.subr.bf16.mxu0 %v708_v56 }
 0x11a   : > { %491 = vmatpush1.bf16.msra.mxu0 %v710_v57 }
 0x11c   : > { %v711_v58 = vld [vmem:[#allocation2 + $0x14] ss:$8 sps:$4 sm:$0xff]   ;;  %v713_v59 = vld [vmem:[#allocation2 + $0x10] ss:$8 sps:$4 sm:$0xff]  }
 0x11d   : > { %492 = vmatprep.subr.bf16.mxu0 %v711_v58 }
 0x11e   : > { %493 = vmatpush1.bf16.msra.mxu0 %v713_v59 }
 0x120   : > { %v454_v60 = vld [vmem:[#allocation2 + $0x20] sm:$0x33] }
 0x121   : > { %v680_v61 = vcombine.high %v454_v60, %v454_v60  ;;  %v679_v62 = vcombine.low %v454_v60, %v454_v60 }
 0x123   : > { %681 = vmatprep.subr.msk.bf16.mxu0 %vm427_vm10, %v680_v61  ;;  %v485_v63 = vsel %vm427_vm10, %v679_v62, 0 }
 0x124   : > { %495 = vmatpush1.bf16.msra.mxu0 %v485_v63 }
 0x127   : > { %682 = vmatmul.mubr.msk.bf16.vlgmr.msra.gmra.mrb[0].mxu0 %vm480_vm6, %v449_v0 }
 0x1fa   : > { %v524_v1 = vpop.f32.mrb[0].mxu0 }
 0x1fb   : > { %531 = vst [vmem:[%s264_s20] sm:$0xff] %v524_v1  ;;  %v526_v2 = vpop.f32.mrb[1].mxu0  ;;  %v538_v3 = vmul.f32 %v524_v1, %v524_v1 }
 0x1fc   : > { %532 = vst [vmem:[%s264_s20 + $0x8] sm:$0xff] %v526_v2  ;;  %v528_v4 = vpop.f32.mrb[2].mxu0  ;;  %v533_v5 = vadd.f32 %v526_v2, %v524_v1  ;;  %v539_v6 = vmul.f32 %v526_v2, %v526_v2 }
 0x1fd   : > { %v529_v7 = vpop.f32.mrb[3].mxu0 }
 0x1fe   : > { %534 = vadd.xlane.f32.xlu0 %v533_v5  ;;  %v540_v8 = vadd.f32 %v539_v6, %v538_v3 }
 0x200   : > { %541 = vadd.xlane.f32.xlu1 %v540_v8 }
 0x28b   : > { %v535_v9 = vpop.xlane.xlu0 %534 }
 0x28c   : > { %537 = vst.msk [vmem:[%s268_s26] sm:$0xff] %vm401_vm15, %v535_v9 }
 0x28d   : > { %v542_v10 = vpop.xlane.xlu1 %541 }
 0x28e   : > { %543 = vst.msk [vmem:[%s272_s29] sm:$0xff] %vm401_vm15, %v542_v10 }
 0x28f PF: > { %s17_s21 = sadd.s32 1, %s722_s21  }
 0x290   : > { %p14_p4 = scmp.ge.s32.totalorder %s17_s21, 4  }
 0x292   :  { %16 = sbr.rel (!%p14_p4) target bundleno = 1 (0x1), region = 90 }

// kernel: inception_forward.8
= control target key start
LH: loop header
LB: loop body
LE: loop exit
PB: predicated region body
PF: predicated region fallthrough
CT: control target
= control target key end

     0   :  { %s793_s21 = smov 0   ;;  %s852_s0 = inlined_call_operand.vmem [shape: f32[2,8,256], index: 0, kind: input, shape index: {}]   ;;  %s853_s1 = inlined_call_operand.vmem [shape: f32[8,1], index: 1, kind: input, shape index: {}]   ;;  %s854_s2 = inlined_call_operand.vmem [shape: f32[8,1], index: 2, kind: input, shape index: {}]   ;;  %s855_s3 = inlined_call_operand.vmem [shape: bf16[8,72], index: 3, kind: input, shape index: {}]   ;;  %s856_s4 = inlined_call_operand.vmem [shape: f32[2,8,256], index: 4, kind: output, shape index: {0}]   ;;  %s857_s5 = inlined_call_operand.vmem [shape: f32[2,8,1], index: 5, kind: output, shape index: {1}]   ;;  %s858_s6 = inlined_call_operand.vmem [shape: f32[2,8,1], index: 6, kind: output, shape index: {2}]  }
   0x1 LB: > { %s679_s22 = sadd.s32 4294967295, %s747_s21   ;;  %p683_p0 = scmp.ge.s32.totalorder %s747_s21, 1  ;;  %s747_s21 = sphi %s793_s21, %s17_s21  }
   0x2   : > { %p217_p1 = scmp.lt.s32.totalorder %s747_s21, 3 }
   0x4   : > { %p218_p2 = pnand %p683_p0, %p217_p1 }
   0x5   : > { %v276_v0 = vld [vmem:[%s853_s1] sm:$0xff] (!%p218_p2)  ;;  %v749_v1 = vmov (!%p218_p2), 0   ;;  %p255_p3 = scmp.lt.s32.totalorder (!%p218_p2), %s679_s22, 1  ;;  %v294_v3 = vlaneseq (!%p218_p2)  ;;  %s750_s7 = smov (!%p218_p2), 16   ;;  %vm360_vm4 = vcmask (!%p218_p2), 1047556   ;;  %vm376_vm5 = vcmask (!%p218_p2), 1043584  }
   0x6   : > { %221 = sbr.rel (%p218_p2) target bundleno = 655 (0x28f), region = 36  ;;  %729 = vset.pattern.permute.xlu0 (!%p218_p2), %v749_v1  ;;  %337 = vst [vmem:[#allocation2] sm:$0xff] (!%p218_p2), %v749_v1  ;;  %338 = vst [vmem:[#allocation2 + $0x8] sm:$0xff] (!%p218_p2), %v749_v1  ;;  %540 = vmatprep.mubr.bf16.mxu0 (!%p218_p2), %v749_v1  ;;  %v284_v2 = vld [vmem:[%s854_s2] sm:$0xff] (!%p218_p2)  ;;  %s751_s8 = smov (!%p218_p2), 15   ;;  %vm392_vm6 = vcmask (!%p218_p2), 1043576  }
   0x7   : > { %339 = vst [vmem:[#allocation2 + $0x10] sm:$0xff] (!%p218_p2), %v749_v1  ;;  %340 = vst [vmem:[#allocation2 + $0x18] sm:$0xff] (!%p218_p2), %v749_v1  ;;  %279 = vperm.xlu0 (!%p218_p2), %729, %v276_v0   ;;  %v295_v4 = vand.u32 (!%p218_p2), 127, %v294_v3  ;;  %s752_s9 = smov (!%p218_p2), 17   ;;  %s753_s10 = smov (!%p218_p2), 127   ;;  %vm373_vm7 = vcmask (!%p218_p2), 130048  }
   0x8   : > { %342 = vst [vmem:[#allocation2 + $0x28] sm:$0xff] (!%p218_p2), %v749_v1  ;;  %343 = vst [vmem:[#allocation2 + $0x30] sm:$0xff] (!%p218_p2), %v749_v1  ;;  %s754_s11 = smov (!%p218_p2), 1   ;;  %s755_s12 = smov (!%p218_p2), 112   ;;  %vm389_vm9 = vcmask (!%p218_p2), 121856   ;;  %vm359_vm11 = vcmask (!%p218_p2), 1043592  }
   0x9   : > { %344 = vst [vmem:[#allocation2 + $0x38] sm:$0xff] (!%p218_p2), %v749_v1  ;;  %345 = vst [vmem:[#allocation2 + $0x40] sm:$0xff] (!%p218_p2), %v749_v1  ;;  %v296_v5 = vadd.s32 (!%p218_p2), 128, %v295_v4  ;;  %v301_v9 = vand.u32 (!%p218_p2), 15, %v295_v4  ;;  %s756_s13 = smov (!%p218_p2), 113   ;;  %s757_s14 = smov (!%p218_p2), 111  }
   0xa   : > { %vm377_vm8 = vmor (!%p218_p2), %vm360_vm4, %vm376_vm5  ;;  %vm412_vm12 = vcmask (!%p218_p2), 1043456   ;;  %vm413_vm13 = vcmask (!%p218_p2), 1039364   ;;  %vm356_vm14 = vcmask (!%p218_p2), 138240   ;;  %vm398_vm5 = vcmask (!%p218_p2), 7168   ;;  %v443_v62 = vld [vmem:[%s855_s3] sm:$0xf] (!%p218_p2) }
   0xb   : > { %287 = vperm.xlu0 (!%p218_p2), %729, %v284_v2   ;;  %v308_v10 = vand.u32 (!%p218_p2), 15, %v296_v5  ;;  %vm329_vm0 = vcmp.ge.s32.totalorder (!%p218_p2), %v301_v9, 1  ;;  %vm321_vm2 = vcmp.le.s32.totalorder (!%p218_p2), %v301_v9, 14  ;;  %vm393_vm10 = vmor (!%p218_p2), %vm360_vm4, %vm392_vm6 }
   0xc   : > { %vm361_vm15 = vmor (!%p218_p2), %vm360_vm4, %vm359_vm11 }
   0xd   : > { %s860_s22 = smov (!%p255_p3, %s679_s22), 1  ;;  %vm330_vm1 = vcmp.ge.s32.totalorder %v308_v10, 1  ;;  %vm322_vm3 = vcmp.le.s32.totalorder %v308_v10, 14 }
   0xe   : > { %s707_s27 = sshll.u32 %s860_s22, 4  ;;  %s688_s20 = sshll.u32 %s860_s22, 3 }
   0xf   : > { %s259_s30 = scalar_lea.vmem %s852_s0, %s707_s27  ;;  %s264_s19 = scalar_lea.vmem %s856_s4, %s707_s27 }
  0x10   : > { %v274_v7 = vld [vmem:[%s259_s30] sm:$0xff]  ;;  %v275_v8 = vld [vmem:[%s259_s30 + $0x8] sm:$0xff]  ;;  %s268_s25 = scalar_lea.vmem %s857_s5, %s688_s20  ;;  %s272_s28 = scalar_lea.vmem %s858_s6, %s688_s20 }
  0x86   : > { %v280_v6 = vpop.permute.xlu0 %279 }
  0x87   : > { %v282_v11 = vmul.f32 %v280_v6, %v274_v7  ;;  %v283_v12 = vmul.f32 %v280_v6, %v275_v8 }
  0x8a   : > { %v288_v13 = vpop.permute.xlu0 %287 }
  0x8b   : > { %v290_v14 = vadd.f32 %v288_v13, %v282_v11  ;;  %v291_v15 = vadd.f32 %v288_v13, %v283_v12 }
  0x8d   : > { %v292_v16 = vmax.f32 %v290_v14, 0.0  ;;  %v293_v17 = vmax.f32 %v291_v15, 0.0 }
  0x8f   : > { %v815_v18 = vpack.c.bf16 %v293_v17, %v292_v16  ;;  %v335_v19 = vsel %vm329_vm0, %v292_v16, 0.0  ;;  %v336_v20 = vsel %vm330_vm1, %v293_v17, 0.0  ;;  %v327_v22 = vsel %vm321_vm2, %v292_v16, 0.0  ;;  %vm414_vm1 = vmor %vm413_vm13, %vm412_vm12 }
  0x90   : > { %v711_v21 = vpack.c.bf16 %v336_v20, %v335_v19  ;;  %v328_v23 = vsel %vm322_vm3, %v293_v17, 0.0  ;;  %vm409_vm0 = vcmask 1039360   ;;  %vm401_vm2 = vcmask 1043464  }
  0x91   : > { %370 = vrot.lane.b32.xlu1 %v815_v18, %s750_s7  ;;  %v709_v24 = vpack.c.bf16 %v328_v23, %v327_v22  ;;  %vm431_vm3 = vcmask 916484   ;;  %vm402_vm6 = vmor %vm360_vm4, %vm401_vm2  ;;  %vm440_vm13 = vcmask 908292   ;;  %vm437_vm4 = vcmask 908288  }
  0x92   : > { %386 = vrot.lane.b32.xlu0 %v711_v21, %s751_s8 }
  0x95   : > { %353 = vrot.lane.b32.xlu1 %v709_v24, %s752_s9 }
  0x96   : > { %406 = vrot.lane.b32.xlu0 %v711_v21, %s753_s10 }
  0x99   : > { %395 = vrot.lane.b32.xlu1 %v709_v24, %s754_s11 }
  0x9a   : > { %425 = vrot.lane.b32.xlu0 %v815_v18, %s755_s12 }
  0x9d   : > { %416 = vrot.lane.b32.xlu1 %v709_v24, %s756_s13 }
  0xa1   : > { %434 = vrot.lane.b32.xlu1 %v711_v21, %s757_s14 }
 0x103   : > { %v371_v25 = vpop.permute.xlu1 %370 }
 0x104   : > { %v372_v26 = vrot.slane %v371_v25, 4  ;;  %v387_v27 = vpop.permute.xlu0 %386 }
 0x105   : > { %v388_v28 = vrot.slane %v387_v27, 4 }
 0x106   : > { %v374_v29 = vsel %vm373_vm7, %v372_v26, %v371_v25  ;;  %vm428_vm7 = vcmask 916480  }
 0x107   : > { %378 = vst.msk [vmem:[#allocation2 + $0x8] sm:$0xff] %vm377_vm8, %v374_v29  ;;  %v390_v30 = vsel %vm389_vm9, %v388_v28, %v387_v27  ;;  %v354_v31 = vpop.permute.xlu1 %353  ;;  %vm432_vm8 = vmor %vm431_vm3, %vm412_vm12  ;;  %vm422_vm9 = vcmask 924676  }
 0x108   : > { %394 = vst.msk [vmem:[#allocation2 + $0x10] sm:$0xff] %vm393_vm10, %v390_v30  ;;  %v355_v32 = vrot.slane %v354_v31, 4  ;;  %v407_v33 = vpop.permute.xlu0 %406  ;;  %vm419_vm10 = vcmask 924672   ;;  %vm423_vm11 = vmor %vm422_vm9, %vm412_vm12 }
 0x109   : > { %v408_v34 = vrot.slane %v407_v33, 4 }
 0x10a   : > { %v357_v35 = vsel %vm356_vm14, %v355_v32, %v354_v31  ;;  %vm441_vm14 = vmor %vm440_vm13, %vm412_vm12 }
 0x10b   : > { %362 = vst.msk [vmem:[#allocation2] sm:$0xff] %vm361_vm15, %v357_v35  ;;  %v410_v36 = vsel %vm409_vm0, %v407_v33, %v408_v34  ;;  %v396_v37 = vpop.permute.xlu1 %395  ;;  %vm498_vm15 = vcmask 588800  }
 0x10c   : > { %415 = vst.msk [vmem:[#allocation2 + $0x28] sm:$0xff] %vm414_vm1, %v410_v36  ;;  %v397_v38 = vrot.slane %v396_v37, 4  ;;  %v426_v39 = vpop.permute.xlu0 %425 }
 0x10d   : > { %v427_v40 = vrot.slane %v426_v39, 4 }
 0x10e   : > { %v399_v41 = vsel %vm398_vm5, %v397_v38, %v396_v37 }
 0x10f   : > { %403 = vst.msk [vmem:[#allocation2 + $0x18] sm:$0xff] %vm402_vm6, %v399_v41  ;;  %v429_v42 = vsel %vm428_vm7, %v426_v39, %v427_v40  ;;  %v417_v43 = vpop.permute.xlu1 %416 }
 0x110   : > { %433 = vst.msk [vmem:[#allocation2 + $0x38] sm:$0xff] %vm432_vm8, %v429_v42  ;;  %v418_v44 = vrot.slane %v417_v43, 4 }
 0x112   : > { %v420_v45 = vsel %vm419_vm10, %v417_v43, %v418_v44  ;;  %v730_v46 = vld [vmem:[#allocation2 + $0x4] ss:$8 sps:$4 sm:$0xff]   ;;  %v732_v47 = vld [vmem:[#allocation2] ss:$8 sps:$4 sm:$0xff]  }
 0x113   : > { %424 = vst.msk [vmem:[#allocation2 + $0x30] sm:$0xff] %vm423_vm11, %v420_v45  ;;  %v435_v48 = vpop.permute.xlu1 %434  ;;  %508 = vmatprep.subr.bf16.mxu0 %v730_v46  ;;  %v449_v50 = vld [vmem:[#allocation2 + $0x28] sm:$0xff] }
 0x114   : > { %v436_v49 = vrot.slane %v435_v48, 4  ;;  %509 = vmatpush1.bf16.msra.mxu0 %v732_v47  ;;  %v698_v54 = vcombine.high %v815_v18, %v449_v50  ;;  %v697_v55 = vcombine.low %v815_v18, %v449_v50 }
 0x116   : > { %v438_v51 = vsel %vm437_vm4, %v435_v48, %v436_v49  ;;  %v733_v52 = vld [vmem:[#allocation2 + $0x14] ss:$8 sps:$4 sm:$0xff]   ;;  %v735_v53 = vld [vmem:[#allocation2 + $0x10] ss:$8 sps:$4 sm:$0xff]  }
 0x117   : > { %442 = vst.msk [vmem:[#allocation2 + $0x40] sm:$0xff] %vm441_vm14, %v438_v51  ;;  %510 = vmatprep.subr.bf16.mxu0 %v733_v52 }
 0x118   : > { %511 = vmatpush1.bf16.msra.mxu0 %v735_v53 }
 0x119   : > { %512 = vmatprep.subr.bf16.mxu0 %v698_v54 }
 0x11a   : > { %v736_v56 = vld [vmem:[#allocation2 + $0x34] ss:$8 sps:$4 sm:$0xff]   ;;  %v738_v58 = vld [vmem:[#allocation2 + $0x30] ss:$8 sps:$4 sm:$0xff]  }
 0x11c   : > { %513 = vmatpush1.bf16.msra.mxu0 %v697_v55 }
 0x11d   : > { %514 = vmatprep.subr.bf16.mxu0 %v736_v56 }
 0x11e   : > { %v452_v57 = vld [vmem:[#allocation2 + $0x40] sm:$0xff] }
 0x11f   : > { %v702_v59 = vcombine.high %v452_v57, %v452_v57  ;;  %v701_v60 = vcombine.low %v452_v57, %v452_v57 }
 0x120   : > { %515 = vmatpush1.bf16.msra.mxu0 %v738_v58 }
 0x121   : > { %703 = vmatprep.subr.msk.bf16.mxu0 %vm412_vm12, %v702_v59  ;;  %v503_v61 = vsel %vm412_vm12, %v701_v60, 0 }
 0x124   : > { %517 = vmatpush1.bf16.msra.mxu0 %v503_v61 }
 0x127   : > { %704 = vmatmul.mubr.msk.bf16.vlgmr.msra.gmra.mrb[0].mxu0 %vm498_vm15, %v443_v62 }
 0x1fa   : > { %v542_v63 = vpop.f32.mrb[0].mxu0 }
 0x1fb   : > { %549 = vst [vmem:[%s264_s19] sm:$0xff] %v542_v63  ;;  %v544_v0 = vpop.f32.mrb[1].mxu0  ;;  %v556_v1 = vmul.f32 %v542_v63, %v542_v63 }
 0x1fc   : > { %550 = vst [vmem:[%s264_s19 + $0x8] sm:$0xff] %v544_v0  ;;  %v546_v2 = vpop.f32.mrb[2].mxu0  ;;  %v551_v3 = vadd.f32 %v544_v0, %v542_v63  ;;  %v557_v4 = vmul.f32 %v544_v0, %v544_v0 }
 0x1fd   : > { %v547_v5 = vpop.f32.mrb[3].mxu0 }
 0x1fe   : > { %552 = vadd.xlane.f32.xlu0 %v551_v3  ;;  %v558_v6 = vadd.f32 %v557_v4, %v556_v1 }
 0x200   : > { %559 = vadd.xlane.f32.xlu1 %v558_v6 }
 0x28b   : > { %v553_v7 = vpop.xlane.xlu0 %552 }
 0x28c   : > { %555 = vst.msk [vmem:[%s268_s25] sm:$0xff] %vm398_vm5, %v553_v7 }
 0x28d   : > { %v560_v8 = vpop.xlane.xlu1 %559 }
 0x28e   : > { %561 = vst.msk [vmem:[%s272_s28] sm:$0xff] %vm398_vm5, %v560_v8 }
 0x28f PF: > { %s17_s21 = sadd.s32 1, %s747_s21  }
 0x290   : > { %p14_p4 = scmp.ge.s32.totalorder %s17_s21, 4  }
 0x292   :  { %16 = sbr.rel (!%p14_p4) target bundleno = 1 (0x1), region = 90 }

// kernel: inception_forward.9
= control target key start
LH: loop header
LB: loop body
LE: loop exit
PB: predicated region body
PF: predicated region fallthrough
CT: control target
= control target key end

     0   :  { %s500_s18 = smov 0   ;;  %s552_s0 = inlined_call_operand.vmem [shape: f32[2,24,256], index: 0, kind: input, shape index: {}]   ;;  %s553_s1 = inlined_call_operand.vmem [shape: f32[2,8,256], index: 1, kind: input, shape index: {}]   ;;  %s554_s2 = inlined_call_operand.vmem [shape: f32[2,8,256], index: 2, kind: input, shape index: {}]   ;;  %s555_s3 = inlined_call_operand.vmem [shape: f32[32,1], index: 3, kind: input, shape index: {}]   ;;  %s556_s4 = inlined_call_operand.vmem [shape: f32[32,1], index: 4, kind: input, shape index: {}]   ;;  %s557_s5 = inlined_call_operand.vmem [shape: f32[2,32,256], index: 5, kind: output, shape index: {}]  }
   0x1 LB: > { %s432_s19 = sadd.s32 4294967295, %s467_s18   ;;  %p436_p0 = scmp.ge.s32.totalorder %s467_s18, 1  ;;  %s467_s18 = sphi %s500_s18, %s15_s18  }
   0x2   : > { %p207_p1 = scmp.lt.s32.totalorder %s467_s18, 3 }
   0x4   : > { %p208_p2 = pnand %p436_p0, %p207_p1 }
   0x5   : > { %v311_v0 = vld [vmem:[%s555_s3 + $0x10] sm:$0xff] (!%p208_p2)  ;;  %v267_v1 = vld [vmem:[%s555_s3] sm:$0xff] (!%p208_p2)  ;;  %v469_v2 = vmov (!%p208_p2), 0   ;;  %v333_v3 = vld [vmem:[%s555_s3 + $0x18] sm:$0xff] (!%p208_p2)  ;;  %p245_p3 = scmp.lt.s32.totalorder (!%p208_p2), %s432_s19, 1 }
   0x6   : > { %211 = sbr.rel (%p208_p2) target bundleno = 153 (0x99), region = 40  ;;  %460 = vset.pattern.permute.xlu1 (!%p208_p2), %v469_v2  ;;  %459 = vset.pattern.permute.xlu0 (!%p208_p2), %v469_v2  ;;  %v289_v4 = vld [vmem:[%s555_s3 + $0x8] sm:$0xff] (!%p208_p2)  ;;  %v275_v6 = vld [vmem:[%s556_s4] sm:$0xff] (!%p208_p2)  ;;  %v341_v7 = vld [vmem:[%s556_s4 + $0x18] sm:$0xff] (!%p208_p2) }
   0x7   : > { %314 = vperm.xlu1 (!%p208_p2), %460, %v311_v0   ;;  %270 = vperm.xlu0 (!%p208_p2), %459, %v267_v1   ;;  %v297_v5 = vld [vmem:[%s556_s4 + $0x8] sm:$0xff] (!%p208_p2)  ;;  %v319_v8 = vld [vmem:[%s556_s4 + $0x10] sm:$0xff] (!%p208_p2) }
   0xb   : > { %336 = vperm.xlu1 (!%p208_p2), %460, %v333_v3   ;;  %292 = vperm.xlu0 (!%p208_p2), %459, %v289_v4  }
   0xd   : > { %s559_s19 = smov (!%p245_p3, %s432_s19), 1 }
   0xe   : > { %s449_s11 = smul.u32 48, %s559_s19  ;;  %s446_s12 = sshll.u32 %s559_s19, 4 }
   0xf   : > { %300 = vperm.xlu1 %460, %v297_v5   ;;  %278 = vperm.xlu0 %459, %v275_v6   ;;  %s254_s15 = scalar_lea.vmem %s553_s1, %s446_s12  ;;  %s259_s23 = scalar_lea.vmem %s554_s2, %s446_s12 }
  0x10   : > { %s249_s20 = scalar_lea.vmem %s552_s0, %s449_s11  ;;  %v287_v11 = vld [vmem:[%s254_s15] sm:$0xff]  ;;  %v288_v16 = vld [vmem:[%s254_s15 + $0x8] sm:$0xff]  ;;  %s448_s24 = sshll.u32 %s559_s19, 6 }
  0x11   : > { %v265_v12 = vld [vmem:[%s249_s20] sm:$0xff]  ;;  %v266_v13 = vld [vmem:[%s249_s20 + $0x8] sm:$0xff]  ;;  %s264_s27 = scalar_lea.vmem %s557_s5, %s448_s24 }
  0x12   : > { %v309_v17 = vld [vmem:[%s259_s23] sm:$0xff]  ;;  %v310_v18 = vld [vmem:[%s259_s23 + $0x8] sm:$0xff] }
  0x13   : > { %344 = vperm.xlu1 %460, %v341_v7   ;;  %322 = vperm.xlu0 %459, %v319_v8   ;;  %v331_v21 = vld [vmem:[%s249_s20 + $0x20] sm:$0xff]  ;;  %v332_v22 = vld [vmem:[%s249_s20 + $0x28] sm:$0xff] }
  0x86   : > { %v315_v9 = vpop.permute.xlu1 %314  ;;  %v271_v10 = vpop.permute.xlu0 %270 }
  0x87   : > { %v273_v19 = vmul.f32 %v271_v10, %v265_v12  ;;  %v274_v20 = vmul.f32 %v271_v10, %v266_v13  ;;  %v317_v31 = vmul.f32 %v315_v9, %v309_v17  ;;  %v318_v32 = vmul.f32 %v315_v9, %v310_v18 }
  0x8a   : > { %v337_v14 = vpop.permute.xlu1 %336  ;;  %v293_v15 = vpop.permute.xlu0 %292 }
  0x8b   : > { %v295_v23 = vmul.f32 %v293_v15, %v287_v11  ;;  %v296_v24 = vmul.f32 %v293_v15, %v288_v16  ;;  %v339_v33 = vmul.f32 %v337_v14, %v331_v21  ;;  %v340_v34 = vmul.f32 %v337_v14, %v332_v22 }
  0x8e   : > { %v301_v25 = vpop.permute.xlu1 %300  ;;  %v279_v26 = vpop.permute.xlu0 %278 }
  0x8f   : > { %v303_v27 = vadd.f32 %v301_v25, %v295_v23  ;;  %v304_v28 = vadd.f32 %v301_v25, %v296_v24  ;;  %v281_v29 = vadd.f32 %v279_v26, %v273_v19  ;;  %v282_v30 = vadd.f32 %v279_v26, %v274_v20 }
  0x91   : > { %v305_v35 = vmax.f32 %v303_v27, 0.0  ;;  %v306_v36 = vmax.f32 %v304_v28, 0.0  ;;  %v283_v37 = vmax.f32 %v281_v29, 0.0  ;;  %v284_v38 = vmax.f32 %v282_v30, 0.0 }
  0x92   : > { %v345_v39 = vpop.permute.xlu1 %344  ;;  %v323_v40 = vpop.permute.xlu0 %322 }
  0x93   : > { %307 = vst [vmem:[%s264_s27 + $0x10] sm:$0xff] %v305_v35  ;;  %308 = vst [vmem:[%s264_s27 + $0x18] sm:$0xff] %v306_v36  ;;  %v347_v41 = vadd.f32 %v345_v39, %v339_v33  ;;  %v348_v42 = vadd.f32 %v345_v39, %v340_v34  ;;  %v325_v43 = vadd.f32 %v323_v40, %v317_v31 }
  0x94   : > { %285 = vst [vmem:[%s264_s27] sm:$0xff] %v283_v37  ;;  %286 = vst [vmem:[%s264_s27 + $0x8] sm:$0xff] %v284_v38  ;;  %v326_v44 = vadd.f32 %v323_v40, %v318_v32 }
  0x95   : > { %v349_v45 = vmax.f32 %v347_v41, 0.0  ;;  %v350_v46 = vmax.f32 %v348_v42, 0.0  ;;  %v327_v47 = vmax.f32 %v325_v43, 0.0 }
  0x96   : > { %v328_v48 = vmax.f32 %v326_v44, 0.0 }
  0x97   : > { %351 = vst [vmem:[%s264_s27 + $0x30] sm:$0xff] %v349_v45  ;;  %352 = vst [vmem:[%s264_s27 + $0x38] sm:$0xff] %v350_v46 }
  0x98   : > { %329 = vst [vmem:[%s264_s27 + $0x20] sm:$0xff] %v327_v47  ;;  %330 = vst [vmem:[%s264_s27 + $0x28] sm:$0xff] %v328_v48 }
  0x99 PF: > { %s15_s18 = sadd.s32 1, %s467_s18  }
  0x9a   : > { %p12_p4 = scmp.ge.s32.totalorder %s15_s18, 4  }
  0x9c   :  { %14 = sbr.rel (!%p12_p4) target bundleno = 1 (0x1), region = 76 }

</bundles_post_ra>
